<compile_context>
chip_gen: v5e
topology: v5e:2x2
jax: 0.10.0
libtpu: 0.0.40
codegen_flags: <defaults>
</compile_context>

<pallas_src>
import functools
import math

import jax
import jax.numpy as jnp
from jax.experimental import pallas as pl
from jax.experimental.pallas import tpu as pltpu  # noqa: F401  (TPU backend)

# ----------------------------- model config ---------------------------------
VOCAB = 33          # ESM alphabet size
HIDDEN = 32
N_HEADS = 2
HEAD_DIM = HIDDEN // N_HEADS
FFN = 64
N_LAYERS = 2
NUM_CLASSES = 4
SEQ = 8
BATCH = 2
LOGITS_PAD = 128    # lane-dense padded logits width
ROWS_PAD = 8        # sublane-dense padded logits rows (>= BATCH)


def _layernorm(v, g, b, eps=1e-5):
    mu = jnp.mean(v, axis=-1, keepdims=True)
    var = jnp.mean((v - mu) ** 2, axis=-1, keepdims=True)
    return (v - mu) * jax.lax.rsqrt(var + eps) * g + b


# --------------------------- fused forward kernel ---------------------------
def fused_esm_kernel(x_ref, bias_ref, cls_sel_ref,
                     ln1g_ref, ln1b_ref,
                     wq_ref, bq_ref, wk_ref, bk_ref, wv_ref, bv_ref,
                     wo_ref, bo_ref, ln2g_ref, ln2b_ref,
                     w1_ref, b1_ref, w2_ref, b2_ref,
                     lnfg_ref, lnfb_ref, wd_ref, bd_ref, wp_ref, bp_ref,
                     o_ref, *, n_layers, n_heads, head_dim, batch, seq):
    B, S = batch, seq
    H = n_heads * head_dim
    N = B * S

    x = x_ref[...]          # (B*S, H) f32 residual slab, VMEM-resident
    bias = bias_ref[...]    # (B, S, S) f32 additive attention bias (pre-broadcast)

    for l in range(n_layers):               # static, unrolled over layers
        # ---- self-attention (pre-LN), per-head weights pre-split at init ----
        h = _layernorm(x, ln1g_ref[l], ln1b_ref[l])
        h16 = h.astype(jnp.bfloat16)                       # MXU operand dtype
        attn = jnp.zeros((N, H), jnp.float32)
        for hd_i in range(n_heads):          # static head loop, no lane slices
            li = l * n_heads + hd_i
            # scale 1/sqrt(head_dim) already folded into wq/bq at init time
            q = (jnp.dot(h16, wq_ref[li], preferred_element_type=jnp.float32)
                 + bq_ref[li])                              # (N, hd) f32
            k = (jnp.dot(h16, wk_ref[li], preferred_element_type=jnp.float32)
                 + bk_ref[li])
            v = (jnp.dot(h16, wv_ref[li], preferred_element_type=jnp.float32)
                 + bv_ref[li])
            # sublane-boundary (S=8) split: layout-preserving reshape
            q3 = q.astype(jnp.bfloat16).reshape(B, S, head_dim)
            k3 = k.astype(jnp.bfloat16).reshape(B, S, head_dim)
            v3 = v.astype(jnp.bfloat16).reshape(B, S, head_dim)
            s = jnp.einsum('bqd,bkd->bqk', q3, k3,
                           preferred_element_type=jnp.float32) + bias  # (B,S,S)
            s = s - jnp.max(s, axis=-1, keepdims=True)
            p = jnp.exp(s)
            p = p * pl.reciprocal(jnp.sum(p, axis=-1, keepdims=True),
                                  approx=True)
            o = jnp.einsum('bqk,bkd->bqd', p.astype(jnp.bfloat16), v3,
                           preferred_element_type=jnp.float32)         # (B,S,hd)
            # concat(o_0,o_1) @ Wo  ==  sum_h o_h @ Wo_h  (no lane concat)
            attn = attn + jnp.dot(
                o.reshape(N, head_dim).astype(jnp.bfloat16), wo_ref[li],
                preferred_element_type=jnp.float32)                     # (N, H)
        x = x + attn + bo_ref[l]

        # ---- MLP (pre-LN) ----
        h2 = _layernorm(x, ln2g_ref[l], ln2b_ref[l])
        ff = (jnp.dot(h2.astype(jnp.bfloat16), w1_ref[l],
                      preferred_element_type=jnp.float32) + b1_ref[l])
        ff = jax.nn.gelu(ff, approximate=True)              # f32 elementwise
        ff = (jnp.dot(ff.astype(jnp.bfloat16), w2_ref[l],
                      preferred_element_type=jnp.float32) + b2_ref[l])
        x = x + ff

    # ---- classification head on token 0 ----
    # one-hot selector matmul pulls rows {0, S, 2S, ...} of the slab into a
    # sublane-padded (ROWS_PAD, H) block -> final store is a full, unmasked
    # (8, 128) vst.  Padded rows carry junk and are sliced away in the wrapper.
    x_cls = jnp.dot(cls_sel_ref[...], x,
                    preferred_element_type=jnp.float32)                 # (8, H)
    hcls = _layernorm(x_cls, lnfg_ref[...], lnfb_ref[...])
    hcls = jnp.tanh(jnp.dot(hcls.astype(jnp.bfloat16), wd_ref[...],
                            preferred_element_type=jnp.float32) + bd_ref[...])
    o_ref[...] = (jnp.dot(hcls.astype(jnp.bfloat16), wp_ref[...],
                          preferred_element_type=jnp.float32) + bp_ref[...])


# ------------------------------- forward ------------------------------------
def finetune_esm_forward(params, input_ids, attention_mask):
    """input_ids (B,S) int32, attention_mask (B,S) {0,1} -> logits (B, NUM_CLASSES)."""
    B, S = input_ids.shape
    assert B <= ROWS_PAD, "CLS selector supports at most ROWS_PAD sequences"

    # glue (plain XLA, done once per call): embedding gather, flat (B*S, H)
    # activation slab, fully-materialized (B,S,S) mask bias, CLS row selector.
    x = jnp.take(params["embed"], input_ids, axis=0).astype(jnp.float32)
    x = x.reshape(B * S, HIDDEN)                                        # (N, H)
    neg = (1.0 - attention_mask.astype(jnp.float32)) * jnp.float32(-1e9)
    attn_bias = jnp.broadcast_to(neg[:, None, :], (B, S, S))            # (B,S,S)
    cls_sel = jnp.zeros((ROWS_PAD, B * S), jnp.float32)
    cls_sel = cls_sel.at[jnp.arange(B), jnp.arange(B) * S].set(1.0)     # (8, N)

    lp = params["layers"]
    hp = params["head"]
    args = [x, attn_bias, cls_sel,
            lp["ln1_g"], lp["ln1_b"],
            lp["wq"], lp["bq"], lp["wk"], lp["bk"], lp["wv"], lp["bv"],
            lp["wo"], lp["bo"], lp["ln2_g"], lp["ln2_b"],
            lp["w1"], lp["b1"], lp["w2"], lp["b2"],
            hp["lnf_g"], hp["lnf_b"], hp["wd"], hp["bd"],
            hp["wp_pad"], hp["bp_pad"]]

    kernel = functools.partial(fused_esm_kernel,
                               n_layers=N_LAYERS, n_heads=N_HEADS,
                               head_dim=HEAD_DIM, batch=B, seq=S)

    # Single fused pallas_call, no grid: every operand (~60 KB total) is placed
    # whole in VMEM; activations never round-trip through HBM between layers.
    logits_pad = pl.pallas_call(
        kernel,
        out_shape=jax.ShapeDtypeStruct((ROWS_PAD, LOGITS_PAD), jnp.float32),
    )(*args)

    return logits_pad[:B, :NUM_CLASSES]


# ----------------------------- parameter init --------------------------------
def init_params(key):
    def nrm(k, shape, scale=0.02):
        return (scale * jax.random.normal(k, shape)).astype(jnp.float32)

    keys = jax.random.split(key, 9)
    LH = N_LAYERS * N_HEADS
    q_scale = 1.0 / math.sqrt(HEAD_DIM)     # folded into Q weights/bias here

    params = {"embed": nrm(keys[0], (VOCAB, HIDDEN))}

    params["layers"] = {
        "ln1_g": jnp.ones((N_LAYERS, 1, HIDDEN), jnp.float32),
        "ln1_b": jnp.zeros((N_LAYERS, 1, HIDDEN), jnp.float32),
        # per-head projection stacks, leading dim = layer*n_heads + head
        "wq": (nrm(keys[1], (LH, HIDDEN, HEAD_DIM)) * q_scale).astype(jnp.bfloat16),
        "bq": jnp.zeros((LH, 1, HEAD_DIM), jnp.float32),   # (pre-scaled; zero)
        "wk": nrm(keys[2], (LH, HIDDEN, HEAD_DIM)).astype(jnp.bfloat16),
        "bk": jnp.zeros((LH, 1, HEAD_DIM), jnp.float32),
        "wv": nrm(keys[3], (LH, HIDDEN, HEAD_DIM)).astype(jnp.bfloat16),
        "bv": jnp.zeros((LH, 1, HEAD_DIM), jnp.float32),
        "wo": nrm(keys[4], (LH, HEAD_DIM, HIDDEN)).astype(jnp.bfloat16),
        "bo": jnp.zeros((N_LAYERS, 1, HIDDEN), jnp.float32),
        "ln2_g": jnp.ones((N_LAYERS, 1, HIDDEN), jnp.float32),
        "ln2_b": jnp.zeros((N_LAYERS, 1, HIDDEN), jnp.float32),
        "w1": nrm(keys[5], (N_LAYERS, HIDDEN, FFN)).astype(jnp.bfloat16),
        "b1": jnp.zeros((N_LAYERS, 1, FFN), jnp.float32),
        "w2": nrm(keys[6], (N_LAYERS, FFN, HIDDEN)).astype(jnp.bfloat16),
        "b2": jnp.zeros((N_LAYERS, 1, HIDDEN), jnp.float32),
    }

    wp = nrm(keys[8], (HIDDEN, NUM_CLASSES))
    wp_pad = (jnp.zeros((HIDDEN, LOGITS_PAD), jnp.float32)
              .at[:, :NUM_CLASSES].set(wp)).astype(jnp.bfloat16)
    params["head"] = {
        "lnf_g": jnp.ones((1, HIDDEN), jnp.float32),
        "lnf_b": jnp.zeros((1, HIDDEN), jnp.float32),
        "wd": nrm(keys[7], (HIDDEN, HIDDEN)).astype(jnp.bfloat16),
        "bd": jnp.zeros((1, HIDDEN), jnp.float32),
        "wp_pad": wp_pad,                         # (H, 128) lane-dense out_proj
        "bp_pad": jnp.zeros((1, LOGITS_PAD), jnp.float32),
    }
    return params


if __name__ == "__main__":
    key = jax.random.PRNGKey(0)
    pkey, ikey = jax.random.split(key)
    params = init_params(pkey)

    input_ids = jax.random.randint(ikey, (BATCH, SEQ), 0, VOCAB, dtype=jnp.int32)
    # batch 0 fully valid, batch 1 has 3 padded positions at the end
    attention_mask = jnp.array(
        [[1] * SEQ, [1] * (SEQ - 3) + [0] * 3], dtype=jnp.int32)

    logits = jax.jit(finetune_esm_forward)(params, input_ids, attention_mask)
    jax.block_until_ready(logits)
    assert logits.shape == (BATCH, NUM_CLASSES)
    assert bool(jnp.all(jnp.isfinite(logits)))
    print("KERNEL_OK")
</pallas_src>

<mosaic_0001>
module attributes {stable_mosaic.version = 11 : i64} {
  func.func @fused_esm_kernel(%arg0: memref<16x32xf32, #tpu.memory_space<vmem>>, %arg1: memref<2x8x8xf32, #tpu.memory_space<vmem>>, %arg2: memref<8x16xf32, #tpu.memory_space<vmem>>, %arg3: memref<2x1x32xf32, #tpu.memory_space<vmem>>, %arg4: memref<2x1x32xf32, #tpu.memory_space<vmem>>, %arg5: memref<4x32x16xbf16, #tpu.memory_space<vmem>>, %arg6: memref<4x1x16xf32, #tpu.memory_space<vmem>>, %arg7: memref<4x32x16xbf16, #tpu.memory_space<vmem>>, %arg8: memref<4x1x16xf32, #tpu.memory_space<vmem>>, %arg9: memref<4x32x16xbf16, #tpu.memory_space<vmem>>, %arg10: memref<4x1x16xf32, #tpu.memory_space<vmem>>, %arg11: memref<4x16x32xbf16, #tpu.memory_space<vmem>>, %arg12: memref<2x1x32xf32, #tpu.memory_space<vmem>>, %arg13: memref<2x1x32xf32, #tpu.memory_space<vmem>>, %arg14: memref<2x1x32xf32, #tpu.memory_space<vmem>>, %arg15: memref<2x32x64xbf16, #tpu.memory_space<vmem>>, %arg16: memref<2x1x64xf32, #tpu.memory_space<vmem>>, %arg17: memref<2x64x32xbf16, #tpu.memory_space<vmem>>, %arg18: memref<2x1x32xf32, #tpu.memory_space<vmem>>, %arg19: memref<1x32xf32, #tpu.memory_space<vmem>>, %arg20: memref<1x32xf32, #tpu.memory_space<vmem>>, %arg21: memref<32x32xbf16, #tpu.memory_space<vmem>>, %arg22: memref<1x32xf32, #tpu.memory_space<vmem>>, %arg23: memref<32x128xbf16, #tpu.memory_space<vmem>>, %arg24: memref<1x128xf32, #tpu.memory_space<vmem>>, %arg25: memref<8x128xf32, #tpu.memory_space<vmem>>) attributes {dimension_semantics = [], scalar_prefetch = 0 : i64, scratch_operands = 0 : i64, tpu.core_type = #tpu.core_type<tc>} {
    %c0 = arith.constant 0 : index
    %c0_0 = arith.constant 0 : index
    %0 = vector.load %arg0[%c0, %c0_0] : memref<16x32xf32, #tpu.memory_space<vmem>>, vector<16x32xf32>
    %c0_1 = arith.constant 0 : index
    %c0_2 = arith.constant 0 : index
    %c0_3 = arith.constant 0 : index
    %1 = vector.load %arg1[%c0_1, %c0_2, %c0_3] : memref<2x8x8xf32, #tpu.memory_space<vmem>>, vector<2x8x8xf32>
    %c0_4 = arith.constant 0 : index
    %c0_5 = arith.constant 0 : index
    %c0_6 = arith.constant 0 : index
    %2 = vector.load %arg3[%c0_4, %c0_5, %c0_6] : memref<2x1x32xf32, #tpu.memory_space<vmem>>, vector<1x1x32xf32>
    %3 = vector.shape_cast %2 : vector<1x1x32xf32> to vector<1x32xf32>
    %c0_7 = arith.constant 0 : index
    %c0_8 = arith.constant 0 : index
    %c0_9 = arith.constant 0 : index
    %4 = vector.load %arg4[%c0_7, %c0_8, %c0_9] : memref<2x1x32xf32, #tpu.memory_space<vmem>>, vector<1x1x32xf32>
    %5 = vector.shape_cast %4 : vector<1x1x32xf32> to vector<1x32xf32>
    %cst = arith.constant dense<0.000000e+00> : vector<16xf32>
    %6 = vector.multi_reduction <add>, %0, %cst [1] : vector<16x32xf32> to vector<16xf32>
    %7 = vector.shape_cast %6 : vector<16xf32> to vector<16x1xf32>
    %cst_10 = arith.constant 3.200000e+01 : f32
    %8 = vector.broadcast %cst_10 : f32 to vector<16x1xf32>
    %9 = arith.divf %7, %8 : vector<16x1xf32>
    %10 = vector.broadcast %9 : vector<16x1xf32> to vector<16x32xf32>
    %11 = arith.subf %0, %10 : vector<16x32xf32>
    %12 = arith.mulf %11, %11 : vector<16x32xf32>
    %cst_11 = arith.constant dense<0.000000e+00> : vector<16xf32>
    %13 = vector.multi_reduction <add>, %12, %cst_11 [1] : vector<16x32xf32> to vector<16xf32>
    %14 = vector.shape_cast %13 : vector<16xf32> to vector<16x1xf32>
    %cst_12 = arith.constant 3.200000e+01 : f32
    %15 = vector.broadcast %cst_12 : f32 to vector<16x1xf32>
    %16 = arith.divf %14, %15 : vector<16x1xf32>
    %17 = vector.broadcast %9 : vector<16x1xf32> to vector<16x32xf32>
    %18 = arith.subf %0, %17 : vector<16x32xf32>
    %cst_13 = arith.constant 9.99999974E-6 : f32
    %19 = vector.broadcast %cst_13 : f32 to vector<16x1xf32>
    %20 = arith.addf %16, %19 : vector<16x1xf32>
    %21 = math.rsqrt %20 : vector<16x1xf32>
    %22 = vector.broadcast %21 : vector<16x1xf32> to vector<16x32xf32>
    %23 = arith.mulf %18, %22 : vector<16x32xf32>
    %24 = vector.broadcast %3 : vector<1x32xf32> to vector<16x32xf32>
    %25 = arith.mulf %23, %24 : vector<16x32xf32>
    %26 = vector.broadcast %5 : vector<1x32xf32> to vector<16x32xf32>
    %27 = arith.addf %25, %26 : vector<16x32xf32>
    %28 = arith.truncf %27 : vector<16x32xf32> to vector<16x32xbf16>
    %cst_14 = arith.constant 0.000000e+00 : f32
    %29 = vector.broadcast %cst_14 : f32 to vector<16x32xf32>
    %c0_15 = arith.constant 0 : index
    %c0_16 = arith.constant 0 : index
    %c0_17 = arith.constant 0 : index
    %30 = vector.load %arg5[%c0_15, %c0_16, %c0_17] : memref<4x32x16xbf16, #tpu.memory_space<vmem>>, vector<1x32x16xbf16>
    %31 = vector.shape_cast %30 : vector<1x32x16xbf16> to vector<32x16xbf16>
    %cst_18 = arith.constant dense<0.000000e+00> : vector<16x16xf32>
    %32 = tpu.matmul %28, %31, %cst_18 {dimension_numbers = #tpu.dot_dimension_numbers<[1], [0], [0], [1], [0, 0, 1, 1], [], []>} : vector<16x32xbf16>, vector<32x16xbf16>, vector<16x16xf32> -> vector<16x16xf32>
    %c0_19 = arith.constant 0 : index
    %c0_20 = arith.constant 0 : index
    %c0_21 = arith.constant 0 : index
    %33 = vector.load %arg6[%c0_19, %c0_20, %c0_21] : memref<4x1x16xf32, #tpu.memory_space<vmem>>, vector<1x1x16xf32>
    %34 = vector.shape_cast %33 : vector<1x1x16xf32> to vector<1x16xf32>
    %35 = vector.broadcast %34 : vector<1x16xf32> to vector<16x16xf32>
    %36 = arith.addf %32, %35 : vector<16x16xf32>
    %c0_22 = arith.constant 0 : index
    %c0_23 = arith.constant 0 : index
    %c0_24 = arith.constant 0 : index
    %37 = vector.load %arg7[%c0_22, %c0_23, %c0_24] : memref<4x32x16xbf16, #tpu.memory_space<vmem>>, vector<1x32x16xbf16>
    %38 = vector.shape_cast %37 : vector<1x32x16xbf16> to vector<32x16xbf16>
    %cst_25 = arith.constant dense<0.000000e+00> : vector<16x16xf32>
    %39 = tpu.matmul %28, %38, %cst_25 {dimension_numbers = #tpu.dot_dimension_numbers<[1], [0], [0], [1], [0, 0, 1, 1], [], []>} : vector<16x32xbf16>, vector<32x16xbf16>, vector<16x16xf32> -> vector<16x16xf32>
    %c0_26 = arith.constant 0 : index
    %c0_27 = arith.constant 0 : index
    %c0_28 = arith.constant 0 : index
    %40 = vector.load %arg8[%c0_26, %c0_27, %c0_28] : memref<4x1x16xf32, #tpu.memory_space<vmem>>, vector<1x1x16xf32>
    %41 = vector.shape_cast %40 : vector<1x1x16xf32> to vector<1x16xf32>
    %42 = vector.broadcast %41 : vector<1x16xf32> to vector<16x16xf32>
    %43 = arith.addf %39, %42 : vector<16x16xf32>
    %c0_29 = arith.constant 0 : index
    %c0_30 = arith.constant 0 : index
    %c0_31 = arith.constant 0 : index
    %44 = vector.load %arg9[%c0_29, %c0_30, %c0_31] : memref<4x32x16xbf16, #tpu.memory_space<vmem>>, vector<1x32x16xbf16>
    %45 = vector.shape_cast %44 : vector<1x32x16xbf16> to vector<32x16xbf16>
    %cst_32 = arith.constant dense<0.000000e+00> : vector<16x16xf32>
    %46 = tpu.matmul %28, %45, %cst_32 {dimension_numbers = #tpu.dot_dimension_numbers<[1], [0], [0], [1], [0, 0, 1, 1], [], []>} : vector<16x32xbf16>, vector<32x16xbf16>, vector<16x16xf32> -> vector<16x16xf32>
    %c0_33 = arith.constant 0 : index
    %c0_34 = arith.constant 0 : index
    %c0_35 = arith.constant 0 : index
    %47 = vector.load %arg10[%c0_33, %c0_34, %c0_35] : memref<4x1x16xf32, #tpu.memory_space<vmem>>, vector<1x1x16xf32>
    %48 = vector.shape_cast %47 : vector<1x1x16xf32> to vector<1x16xf32>
    %49 = vector.broadcast %48 : vector<1x16xf32> to vector<16x16xf32>
    %50 = arith.addf %46, %49 : vector<16x16xf32>
    %51 = arith.truncf %36 : vector<16x16xf32> to vector<16x16xbf16>
    %52 = vector.shape_cast %51 : vector<16x16xbf16> to vector<2x8x16xbf16>
    %53 = arith.truncf %43 : vector<16x16xf32> to vector<16x16xbf16>
    %54 = vector.shape_cast %53 : vector<16x16xbf16> to vector<2x8x16xbf16>
    %55 = arith.truncf %50 : vector<16x16xf32> to vector<16x16xbf16>
    %56 = vector.shape_cast %55 : vector<16x16xbf16> to vector<2x8x16xbf16>
    "tpu.trace_start"() <{level = 10 : i32, message = "bqd,bkd->bqk"}> : () -> ()
    %cst_36 = arith.constant dense<0.000000e+00> : vector<2x8x8xf32>
    %57 = tpu.matmul %52, %54, %cst_36 {dimension_numbers = #tpu.dot_dimension_numbers<[2], [2], [1], [1], [0, 0, 0, 1, 1, 1], [0], [0]>} : vector<2x8x16xbf16>, vector<2x8x16xbf16>, vector<2x8x8xf32> -> vector<2x8x8xf32>
    "tpu.trace_stop"() : () -> ()
    %58 = arith.addf %57, %1 : vector<2x8x8xf32>
    %cst_37 = arith.constant dense<0xFF800000> : vector<2x8xf32>
    %59 = vector.multi_reduction <maximumf>, %58, %cst_37 [2] : vector<2x8x8xf32> to vector<2x8xf32>
    %60 = vector.shape_cast %59 : vector<2x8xf32> to vector<2x8x1xf32>
    %61 = vector.broadcast %60 : vector<2x8x1xf32> to vector<2x8x8xf32>
    %62 = arith.subf %58, %61 : vector<2x8x8xf32>
    %63 = math.exp %62 : vector<2x8x8xf32>
    %cst_38 = arith.constant dense<0.000000e+00> : vector<2x8xf32>
    %64 = vector.multi_reduction <add>, %63, %cst_38 [2] : vector<2x8x8xf32> to vector<2x8xf32>
    %65 = vector.shape_cast %64 : vector<2x8xf32> to vector<2x8x1xf32>
    %66 = tpu.reciprocal %65 {approx = true} : vector<2x8x1xf32> -> vector<2x8x1xf32>
    %67 = vector.broadcast %66 : vector<2x8x1xf32> to vector<2x8x8xf32>
    %68 = arith.mulf %63, %67 : vector<2x8x8xf32>
    %69 = arith.truncf %68 : vector<2x8x8xf32> to vector<2x8x8xbf16>
    "tpu.trace_start"() <{level = 10 : i32, message = "bqk,bkd->bqd"}> : () -> ()
    %cst_39 = arith.constant dense<0.000000e+00> : vector<2x8x16xf32>
    %70 = tpu.matmul %69, %56, %cst_39 {dimension_numbers = #tpu.dot_dimension_numbers<[2], [1], [1], [2], [0, 0, 0, 1, 1, 2], [0], [0]>} : vector<2x8x8xbf16>, vector<2x8x16xbf16>, vector<2x8x16xf32> -> vector<2x8x16xf32>
    "tpu.trace_stop"() : () -> ()
    %71 = vector.shape_cast %70 : vector<2x8x16xf32> to vector<16x16xf32>
    %72 = arith.truncf %71 : vector<16x16xf32> to vector<16x16xbf16>
    %c0_40 = arith.constant 0 : index
    %c0_41 = arith.constant 0 : index
    %c0_42 = arith.constant 0 : index
    %73 = vector.load %arg11[%c0_40, %c0_41, %c0_42] : memref<4x16x32xbf16, #tpu.memory_space<vmem>>, vector<1x16x32xbf16>
    %74 = vector.shape_cast %73 : vector<1x16x32xbf16> to vector<16x32xbf16>
    %cst_43 = arith.constant dense<0.000000e+00> : vector<16x32xf32>
    %75 = tpu.matmul %72, %74, %cst_43 {dimension_numbers = #tpu.dot_dimension_numbers<[1], [0], [0], [1], [0, 0, 1, 1], [], []>} : vector<16x16xbf16>, vector<16x32xbf16>, vector<16x32xf32> -> vector<16x32xf32>
    %76 = arith.addf %29, %75 : vector<16x32xf32>
    %c1 = arith.constant 1 : index
    %c0_44 = arith.constant 0 : index
    %c0_45 = arith.constant 0 : index
    %77 = vector.load %arg5[%c1, %c0_44, %c0_45] : memref<4x32x16xbf16, #tpu.memory_space<vmem>>, vector<1x32x16xbf16>
    %78 = vector.shape_cast %77 : vector<1x32x16xbf16> to vector<32x16xbf16>
    %cst_46 = arith.constant dense<0.000000e+00> : vector<16x16xf32>
    %79 = tpu.matmul %28, %78, %cst_46 {dimension_numbers = #tpu.dot_dimension_numbers<[1], [0], [0], [1], [0, 0, 1, 1], [], []>} : vector<16x32xbf16>, vector<32x16xbf16>, vector<16x16xf32> -> vector<16x16xf32>
    %c1_47 = arith.constant 1 : index
    %c0_48 = arith.constant 0 : index
    %c0_49 = arith.constant 0 : index
    %80 = vector.load %arg6[%c1_47, %c0_48, %c0_49] : memref<4x1x16xf32, #tpu.memory_space<vmem>>, vector<1x1x16xf32>
    %81 = vector.shape_cast %80 : vector<1x1x16xf32> to vector<1x16xf32>
    %82 = vector.broadcast %81 : vector<1x16xf32> to vector<16x16xf32>
    %83 = arith.addf %79, %82 : vector<16x16xf32>
    %c1_50 = arith.constant 1 : index
    %c0_51 = arith.constant 0 : index
    %c0_52 = arith.constant 0 : index
    %84 = vector.load %arg7[%c1_50, %c0_51, %c0_52] : memref<4x32x16xbf16, #tpu.memory_space<vmem>>, vector<1x32x16xbf16>
    %85 = vector.shape_cast %84 : vector<1x32x16xbf16> to vector<32x16xbf16>
    %cst_53 = arith.constant dense<0.000000e+00> : vector<16x16xf32>
    %86 = tpu.matmul %28, %85, %cst_53 {dimension_numbers = #tpu.dot_dimension_numbers<[1], [0], [0], [1], [0, 0, 1, 1], [], []>} : vector<16x32xbf16>, vector<32x16xbf16>, vector<16x16xf32> -> vector<16x16xf32>
    %c1_54 = arith.constant 1 : index
    %c0_55 = arith.constant 0 : index
    %c0_56 = arith.constant 0 : index
    %87 = vector.load %arg8[%c1_54, %c0_55, %c0_56] : memref<4x1x16xf32, #tpu.memory_space<vmem>>, vector<1x1x16xf32>
    %88 = vector.shape_cast %87 : vector<1x1x16xf32> to vector<1x16xf32>
    %89 = vector.broadcast %88 : vector<1x16xf32> to vector<16x16xf32>
    %90 = arith.addf %86, %89 : vector<16x16xf32>
    %c1_57 = arith.constant 1 : index
    %c0_58 = arith.constant 0 : index
    %c0_59 = arith.constant 0 : index
    %91 = vector.load %arg9[%c1_57, %c0_58, %c0_59] : memref<4x32x16xbf16, #tpu.memory_space<vmem>>, vector<1x32x16xbf16>
    %92 = vector.shape_cast %91 : vector<1x32x16xbf16> to vector<32x16xbf16>
    %cst_60 = arith.constant dense<0.000000e+00> : vector<16x16xf32>
    %93 = tpu.matmul %28, %92, %cst_60 {dimension_numbers = #tpu.dot_dimension_numbers<[1], [0], [0], [1], [0, 0, 1, 1], [], []>} : vector<16x32xbf16>, vector<32x16xbf16>, vector<16x16xf32> -> vector<16x16xf32>
    %c1_61 = arith.constant 1 : index
    %c0_62 = arith.constant 0 : index
    %c0_63 = arith.constant 0 : index
    %94 = vector.load %arg10[%c1_61, %c0_62, %c0_63] : memref<4x1x16xf32, #tpu.memory_space<vmem>>, vector<1x1x16xf32>
    %95 = vector.shape_cast %94 : vector<1x1x16xf32> to vector<1x16xf32>
    %96 = vector.broadcast %95 : vector<1x16xf32> to vector<16x16xf32>
    %97 = arith.addf %93, %96 : vector<16x16xf32>
    %98 = arith.truncf %83 : vector<16x16xf32> to vector<16x16xbf16>
    %99 = vector.shape_cast %98 : vector<16x16xbf16> to vector<2x8x16xbf16>
    %100 = arith.truncf %90 : vector<16x16xf32> to vector<16x16xbf16>
    %101 = vector.shape_cast %100 : vector<16x16xbf16> to vector<2x8x16xbf16>
    %102 = arith.truncf %97 : vector<16x16xf32> to vector<16x16xbf16>
    %103 = vector.shape_cast %102 : vector<16x16xbf16> to vector<2x8x16xbf16>
    "tpu.trace_start"() <{level = 10 : i32, message = "bqd,bkd->bqk"}> : () -> ()
    %cst_64 = arith.constant dense<0.000000e+00> : vector<2x8x8xf32>
    %104 = tpu.matmul %99, %101, %cst_64 {dimension_numbers = #tpu.dot_dimension_numbers<[2], [2], [1], [1], [0, 0, 0, 1, 1, 1], [0], [0]>} : vector<2x8x16xbf16>, vector<2x8x16xbf16>, vector<2x8x8xf32> -> vector<2x8x8xf32>
    "tpu.trace_stop"() : () -> ()
    %105 = arith.addf %104, %1 : vector<2x8x8xf32>
    %cst_65 = arith.constant dense<0xFF800000> : vector<2x8xf32>
    %106 = vector.multi_reduction <maximumf>, %105, %cst_65 [2] : vector<2x8x8xf32> to vector<2x8xf32>
    %107 = vector.shape_cast %106 : vector<2x8xf32> to vector<2x8x1xf32>
    %108 = vector.broadcast %107 : vector<2x8x1xf32> to vector<2x8x8xf32>
    %109 = arith.subf %105, %108 : vector<2x8x8xf32>
    %110 = math.exp %109 : vector<2x8x8xf32>
    %cst_66 = arith.constant dense<0.000000e+00> : vector<2x8xf32>
    %111 = vector.multi_reduction <add>, %110, %cst_66 [2] : vector<2x8x8xf32> to vector<2x8xf32>
    %112 = vector.shape_cast %111 : vector<2x8xf32> to vector<2x8x1xf32>
    %113 = tpu.reciprocal %112 {approx = true} : vector<2x8x1xf32> -> vector<2x8x1xf32>
    %114 = vector.broadcast %113 : vector<2x8x1xf32> to vector<2x8x8xf32>
    %115 = arith.mulf %110, %114 : vector<2x8x8xf32>
    %116 = arith.truncf %115 : vector<2x8x8xf32> to vector<2x8x8xbf16>
    "tpu.trace_start"() <{level = 10 : i32, message = "bqk,bkd->bqd"}> : () -> ()
    %cst_67 = arith.constant dense<0.000000e+00> : vector<2x8x16xf32>
    %117 = tpu.matmul %116, %103, %cst_67 {dimension_numbers = #tpu.dot_dimension_numbers<[2], [1], [1], [2], [0, 0, 0, 1, 1, 2], [0], [0]>} : vector<2x8x8xbf16>, vector<2x8x16xbf16>, vector<2x8x16xf32> -> vector<2x8x16xf32>
    "tpu.trace_stop"() : () -> ()
    %118 = vector.shape_cast %117 : vector<2x8x16xf32> to vector<16x16xf32>
    %119 = arith.truncf %118 : vector<16x16xf32> to vector<16x16xbf16>
    %c1_68 = arith.constant 1 : index
    %c0_69 = arith.constant 0 : index
    %c0_70 = arith.constant 0 : index
    %120 = vector.load %arg11[%c1_68, %c0_69, %c0_70] : memref<4x16x32xbf16, #tpu.memory_space<vmem>>, vector<1x16x32xbf16>
    %121 = vector.shape_cast %120 : vector<1x16x32xbf16> to vector<16x32xbf16>
    %cst_71 = arith.constant dense<0.000000e+00> : vector<16x32xf32>
    %122 = tpu.matmul %119, %121, %cst_71 {dimension_numbers = #tpu.dot_dimension_numbers<[1], [0], [0], [1], [0, 0, 1, 1], [], []>} : vector<16x16xbf16>, vector<16x32xbf16>, vector<16x32xf32> -> vector<16x32xf32>
    %123 = arith.addf %76, %122 : vector<16x32xf32>
    %124 = arith.addf %0, %123 : vector<16x32xf32>
    %c0_72 = arith.constant 0 : index
    %c0_73 = arith.constant 0 : index
    %c0_74 = arith.constant 0 : index
    %125 = vector.load %arg12[%c0_72, %c0_73, %c0_74] : memref<2x1x32xf32, #tpu.memory_space<vmem>>, vector<1x1x32xf32>
    %126 = vector.shape_cast %125 : vector<1x1x32xf32> to vector<1x32xf32>
    %127 = vector.broadcast %126 : vector<1x32xf32> to vector<16x32xf32>
    %128 = arith.addf %124, %127 : vector<16x32xf32>
    %c0_75 = arith.constant 0 : index
    %c0_76 = arith.constant 0 : index
    %c0_77 = arith.constant 0 : index
    %129 = vector.load %arg13[%c0_75, %c0_76, %c0_77] : memref<2x1x32xf32, #tpu.memory_space<vmem>>, vector<1x1x32xf32>
    %130 = vector.shape_cast %129 : vector<1x1x32xf32> to vector<1x32xf32>
    %c0_78 = arith.constant 0 : index
    %c0_79 = arith.constant 0 : index
    %c0_80 = arith.constant 0 : index
    %131 = vector.load %arg14[%c0_78, %c0_79, %c0_80] : memref<2x1x32xf32, #tpu.memory_space<vmem>>, vector<1x1x32xf32>
    %132 = vector.shape_cast %131 : vector<1x1x32xf32> to vector<1x32xf32>
    %cst_81 = arith.constant dense<0.000000e+00> : vector<16xf32>
    %133 = vector.multi_reduction <add>, %128, %cst_81 [1] : vector<16x32xf32> to vector<16xf32>
    %134 = vector.shape_cast %133 : vector<16xf32> to vector<16x1xf32>
    %cst_82 = arith.constant 3.200000e+01 : f32
    %135 = vector.broadcast %cst_82 : f32 to vector<16x1xf32>
    %136 = arith.divf %134, %135 : vector<16x1xf32>
    %137 = vector.broadcast %136 : vector<16x1xf32> to vector<16x32xf32>
    %138 = arith.subf %128, %137 : vector<16x32xf32>
    %139 = arith.mulf %138, %138 : vector<16x32xf32>
    %cst_83 = arith.constant dense<0.000000e+00> : vector<16xf32>
    %140 = vector.multi_reduction <add>, %139, %cst_83 [1] : vector<16x32xf32> to vector<16xf32>
    %141 = vector.shape_cast %140 : vector<16xf32> to vector<16x1xf32>
    %cst_84 = arith.constant 3.200000e+01 : f32
    %142 = vector.broadcast %cst_84 : f32 to vector<16x1xf32>
    %143 = arith.divf %141, %142 : vector<16x1xf32>
    %144 = vector.broadcast %136 : vector<16x1xf32> to vector<16x32xf32>
    %145 = arith.subf %128, %144 : vector<16x32xf32>
    %cst_85 = arith.constant 9.99999974E-6 : f32
    %146 = vector.broadcast %cst_85 : f32 to vector<16x1xf32>
    %147 = arith.addf %143, %146 : vector<16x1xf32>
    %148 = math.rsqrt %147 : vector<16x1xf32>
    %149 = vector.broadcast %148 : vector<16x1xf32> to vector<16x32xf32>
    %150 = arith.mulf %145, %149 : vector<16x32xf32>
    %151 = vector.broadcast %130 : vector<1x32xf32> to vector<16x32xf32>
    %152 = arith.mulf %150, %151 : vector<16x32xf32>
    %153 = vector.broadcast %132 : vector<1x32xf32> to vector<16x32xf32>
    %154 = arith.addf %152, %153 : vector<16x32xf32>
    %155 = arith.truncf %154 : vector<16x32xf32> to vector<16x32xbf16>
    %c0_86 = arith.constant 0 : index
    %c0_87 = arith.constant 0 : index
    %c0_88 = arith.constant 0 : index
    %156 = vector.load %arg15[%c0_86, %c0_87, %c0_88] : memref<2x32x64xbf16, #tpu.memory_space<vmem>>, vector<1x32x64xbf16>
    %157 = vector.shape_cast %156 : vector<1x32x64xbf16> to vector<32x64xbf16>
    %cst_89 = arith.constant dense<0.000000e+00> : vector<16x64xf32>
    %158 = tpu.matmul %155, %157, %cst_89 {dimension_numbers = #tpu.dot_dimension_numbers<[1], [0], [0], [1], [0, 0, 1, 1], [], []>} : vector<16x32xbf16>, vector<32x64xbf16>, vector<16x64xf32> -> vector<16x64xf32>
    %c0_90 = arith.constant 0 : index
    %c0_91 = arith.constant 0 : index
    %c0_92 = arith.constant 0 : index
    %159 = vector.load %arg16[%c0_90, %c0_91, %c0_92] : memref<2x1x64xf32, #tpu.memory_space<vmem>>, vector<1x1x64xf32>
    %160 = vector.shape_cast %159 : vector<1x1x64xf32> to vector<1x64xf32>
    %161 = vector.broadcast %160 : vector<1x64xf32> to vector<16x64xf32>
    %162 = arith.addf %158, %161 : vector<16x64xf32>
    %163 = arith.mulf %162, %162 : vector<16x64xf32>
    %164 = arith.mulf %162, %163 : vector<16x64xf32>
    %cst_93 = arith.constant 4.471500e-02 : f32
    %165 = vector.broadcast %cst_93 : f32 to vector<16x64xf32>
    %166 = arith.mulf %165, %164 : vector<16x64xf32>
    %167 = arith.addf %162, %166 : vector<16x64xf32>
    %cst_94 = arith.constant 0.797884583 : f32
    %168 = vector.broadcast %cst_94 : f32 to vector<16x64xf32>
    %169 = arith.mulf %168, %167 : vector<16x64xf32>
    %170 = math.tanh %169 : vector<16x64xf32>
    %cst_95 = arith.constant 1.000000e+00 : f32
    %171 = vector.broadcast %cst_95 : f32 to vector<16x64xf32>
    %172 = arith.addf %171, %170 : vector<16x64xf32>
    %cst_96 = arith.constant 5.000000e-01 : f32
    %173 = vector.broadcast %cst_96 : f32 to vector<16x64xf32>
    %174 = arith.mulf %173, %172 : vector<16x64xf32>
    %175 = arith.mulf %162, %174 : vector<16x64xf32>
    %176 = arith.truncf %175 : vector<16x64xf32> to vector<16x64xbf16>
    %c0_97 = arith.constant 0 : index
    %c0_98 = arith.constant 0 : index
    %c0_99 = arith.constant 0 : index
    %177 = vector.load %arg17[%c0_97, %c0_98, %c0_99] : memref<2x64x32xbf16, #tpu.memory_space<vmem>>, vector<1x64x32xbf16>
    %178 = vector.shape_cast %177 : vector<1x64x32xbf16> to vector<64x32xbf16>
    %cst_100 = arith.constant dense<0.000000e+00> : vector<16x32xf32>
    %179 = tpu.matmul %176, %178, %cst_100 {dimension_numbers = #tpu.dot_dimension_numbers<[1], [0], [0], [1], [0, 0, 1, 1], [], []>} : vector<16x64xbf16>, vector<64x32xbf16>, vector<16x32xf32> -> vector<16x32xf32>
    %c0_101 = arith.constant 0 : index
    %c0_102 = arith.constant 0 : index
    %c0_103 = arith.constant 0 : index
    %180 = vector.load %arg18[%c0_101, %c0_102, %c0_103] : memref<2x1x32xf32, #tpu.memory_space<vmem>>, vector<1x1x32xf32>
    %181 = vector.shape_cast %180 : vector<1x1x32xf32> to vector<1x32xf32>
    %182 = vector.broadcast %181 : vector<1x32xf32> to vector<16x32xf32>
    %183 = arith.addf %179, %182 : vector<16x32xf32>
    %184 = arith.addf %128, %183 : vector<16x32xf32>
    %c1_104 = arith.constant 1 : index
    %c0_105 = arith.constant 0 : index
    %c0_106 = arith.constant 0 : index
    %185 = vector.load %arg3[%c1_104, %c0_105, %c0_106] : memref<2x1x32xf32, #tpu.memory_space<vmem>>, vector<1x1x32xf32>
    %186 = vector.shape_cast %185 : vector<1x1x32xf32> to vector<1x32xf32>
    %c1_107 = arith.constant 1 : index
    %c0_108 = arith.constant 0 : index
    %c0_109 = arith.constant 0 : index
    %187 = vector.load %arg4[%c1_107, %c0_108, %c0_109] : memref<2x1x32xf32, #tpu.memory_space<vmem>>, vector<1x1x32xf32>
    %188 = vector.shape_cast %187 : vector<1x1x32xf32> to vector<1x32xf32>
    %cst_110 = arith.constant dense<0.000000e+00> : vector<16xf32>
    %189 = vector.multi_reduction <add>, %184, %cst_110 [1] : vector<16x32xf32> to vector<16xf32>
    %190 = vector.shape_cast %189 : vector<16xf32> to vector<16x1xf32>
    %cst_111 = arith.constant 3.200000e+01 : f32
    %191 = vector.broadcast %cst_111 : f32 to vector<16x1xf32>
    %192 = arith.divf %190, %191 : vector<16x1xf32>
    %193 = vector.broadcast %192 : vector<16x1xf32> to vector<16x32xf32>
    %194 = arith.subf %184, %193 : vector<16x32xf32>
    %195 = arith.mulf %194, %194 : vector<16x32xf32>
    %cst_112 = arith.constant dense<0.000000e+00> : vector<16xf32>
    %196 = vector.multi_reduction <add>, %195, %cst_112 [1] : vector<16x32xf32> to vector<16xf32>
    %197 = vector.shape_cast %196 : vector<16xf32> to vector<16x1xf32>
    %cst_113 = arith.constant 3.200000e+01 : f32
    %198 = vector.broadcast %cst_113 : f32 to vector<16x1xf32>
    %199 = arith.divf %197, %198 : vector<16x1xf32>
    %200 = vector.broadcast %192 : vector<16x1xf32> to vector<16x32xf32>
    %201 = arith.subf %184, %200 : vector<16x32xf32>
    %cst_114 = arith.constant 9.99999974E-6 : f32
    %202 = vector.broadcast %cst_114 : f32 to vector<16x1xf32>
    %203 = arith.addf %199, %202 : vector<16x1xf32>
    %204 = math.rsqrt %203 : vector<16x1xf32>
    %205 = vector.broadcast %204 : vector<16x1xf32> to vector<16x32xf32>
    %206 = arith.mulf %201, %205 : vector<16x32xf32>
    %207 = vector.broadcast %186 : vector<1x32xf32> to vector<16x32xf32>
    %208 = arith.mulf %206, %207 : vector<16x32xf32>
    %209 = vector.broadcast %188 : vector<1x32xf32> to vector<16x32xf32>
    %210 = arith.addf %208, %209 : vector<16x32xf32>
    %211 = arith.truncf %210 : vector<16x32xf32> to vector<16x32xbf16>
    %cst_115 = arith.constant 0.000000e+00 : f32
    %212 = vector.broadcast %cst_115 : f32 to vector<16x32xf32>
    %c2 = arith.constant 2 : index
    %c0_116 = arith.constant 0 : index
    %c0_117 = arith.constant 0 : index
    %213 = vector.load %arg5[%c2, %c0_116, %c0_117] : memref<4x32x16xbf16, #tpu.memory_space<vmem>>, vector<1x32x16xbf16>
    %214 = vector.shape_cast %213 : vector<1x32x16xbf16> to vector<32x16xbf16>
    %cst_118 = arith.constant dense<0.000000e+00> : vector<16x16xf32>
    %215 = tpu.matmul %211, %214, %cst_118 {dimension_numbers = #tpu.dot_dimension_numbers<[1], [0], [0], [1], [0, 0, 1, 1], [], []>} : vector<16x32xbf16>, vector<32x16xbf16>, vector<16x16xf32> -> vector<16x16xf32>
    %c2_119 = arith.constant 2 : index
    %c0_120 = arith.constant 0 : index
    %c0_121 = arith.constant 0 : index
    %216 = vector.load %arg6[%c2_119, %c0_120, %c0_121] : memref<4x1x16xf32, #tpu.memory_space<vmem>>, vector<1x1x16xf32>
    %217 = vector.shape_cast %216 : vector<1x1x16xf32> to vector<1x16xf32>
    %218 = vector.broadcast %217 : vector<1x16xf32> to vector<16x16xf32>
    %219 = arith.addf %215, %218 : vector<16x16xf32>
    %c2_122 = arith.constant 2 : index
    %c0_123 = arith.constant 0 : index
    %c0_124 = arith.constant 0 : index
    %220 = vector.load %arg7[%c2_122, %c0_123, %c0_124] : memref<4x32x16xbf16, #tpu.memory_space<vmem>>, vector<1x32x16xbf16>
    %221 = vector.shape_cast %220 : vector<1x32x16xbf16> to vector<32x16xbf16>
    %cst_125 = arith.constant dense<0.000000e+00> : vector<16x16xf32>
    %222 = tpu.matmul %211, %221, %cst_125 {dimension_numbers = #tpu.dot_dimension_numbers<[1], [0], [0], [1], [0, 0, 1, 1], [], []>} : vector<16x32xbf16>, vector<32x16xbf16>, vector<16x16xf32> -> vector<16x16xf32>
    %c2_126 = arith.constant 2 : index
    %c0_127 = arith.constant 0 : index
    %c0_128 = arith.constant 0 : index
    %223 = vector.load %arg8[%c2_126, %c0_127, %c0_128] : memref<4x1x16xf32, #tpu.memory_space<vmem>>, vector<1x1x16xf32>
    %224 = vector.shape_cast %223 : vector<1x1x16xf32> to vector<1x16xf32>
    %225 = vector.broadcast %224 : vector<1x16xf32> to vector<16x16xf32>
    %226 = arith.addf %222, %225 : vector<16x16xf32>
    %c2_129 = arith.constant 2 : index
    %c0_130 = arith.constant 0 : index
    %c0_131 = arith.constant 0 : index
    %227 = vector.load %arg9[%c2_129, %c0_130, %c0_131] : memref<4x32x16xbf16, #tpu.memory_space<vmem>>, vector<1x32x16xbf16>
    %228 = vector.shape_cast %227 : vector<1x32x16xbf16> to vector<32x16xbf16>
    %cst_132 = arith.constant dense<0.000000e+00> : vector<16x16xf32>
    %229 = tpu.matmul %211, %228, %cst_132 {dimension_numbers = #tpu.dot_dimension_numbers<[1], [0], [0], [1], [0, 0, 1, 1], [], []>} : vector<16x32xbf16>, vector<32x16xbf16>, vector<16x16xf32> -> vector<16x16xf32>
    %c2_133 = arith.constant 2 : index
    %c0_134 = arith.constant 0 : index
    %c0_135 = arith.constant 0 : index
    %230 = vector.load %arg10[%c2_133, %c0_134, %c0_135] : memref<4x1x16xf32, #tpu.memory_space<vmem>>, vector<1x1x16xf32>
    %231 = vector.shape_cast %230 : vector<1x1x16xf32> to vector<1x16xf32>
    %232 = vector.broadcast %231 : vector<1x16xf32> to vector<16x16xf32>
    %233 = arith.addf %229, %232 : vector<16x16xf32>
    %234 = arith.truncf %219 : vector<16x16xf32> to vector<16x16xbf16>
    %235 = vector.shape_cast %234 : vector<16x16xbf16> to vector<2x8x16xbf16>
    %236 = arith.truncf %226 : vector<16x16xf32> to vector<16x16xbf16>
    %237 = vector.shape_cast %236 : vector<16x16xbf16> to vector<2x8x16xbf16>
    %238 = arith.truncf %233 : vector<16x16xf32> to vector<16x16xbf16>
    %239 = vector.shape_cast %238 : vector<16x16xbf16> to vector<2x8x16xbf16>
    "tpu.trace_start"() <{level = 10 : i32, message = "bqd,bkd->bqk"}> : () -> ()
    %cst_136 = arith.constant dense<0.000000e+00> : vector<2x8x8xf32>
    %240 = tpu.matmul %235, %237, %cst_136 {dimension_numbers = #tpu.dot_dimension_numbers<[2], [2], [1], [1], [0, 0, 0, 1, 1, 1], [0], [0]>} : vector<2x8x16xbf16>, vector<2x8x16xbf16>, vector<2x8x8xf32> -> vector<2x8x8xf32>
    "tpu.trace_stop"() : () -> ()
    %241 = arith.addf %240, %1 : vector<2x8x8xf32>
    %cst_137 = arith.constant dense<0xFF800000> : vector<2x8xf32>
    %242 = vector.multi_reduction <maximumf>, %241, %cst_137 [2] : vector<2x8x8xf32> to vector<2x8xf32>
    %243 = vector.shape_cast %242 : vector<2x8xf32> to vector<2x8x1xf32>
    %244 = vector.broadcast %243 : vector<2x8x1xf32> to vector<2x8x8xf32>
    %245 = arith.subf %241, %244 : vector<2x8x8xf32>
    %246 = math.exp %245 : vector<2x8x8xf32>
    %cst_138 = arith.constant dense<0.000000e+00> : vector<2x8xf32>
    %247 = vector.multi_reduction <add>, %246, %cst_138 [2] : vector<2x8x8xf32> to vector<2x8xf32>
    %248 = vector.shape_cast %247 : vector<2x8xf32> to vector<2x8x1xf32>
    %249 = tpu.reciprocal %248 {approx = true} : vector<2x8x1xf32> -> vector<2x8x1xf32>
    %250 = vector.broadcast %249 : vector<2x8x1xf32> to vector<2x8x8xf32>
    %251 = arith.mulf %246, %250 : vector<2x8x8xf32>
    %252 = arith.truncf %251 : vector<2x8x8xf32> to vector<2x8x8xbf16>
    "tpu.trace_start"() <{level = 10 : i32, message = "bqk,bkd->bqd"}> : () -> ()
    %cst_139 = arith.constant dense<0.000000e+00> : vector<2x8x16xf32>
    %253 = tpu.matmul %252, %239, %cst_139 {dimension_numbers = #tpu.dot_dimension_numbers<[2], [1], [1], [2], [0, 0, 0, 1, 1, 2], [0], [0]>} : vector<2x8x8xbf16>, vector<2x8x16xbf16>, vector<2x8x16xf32> -> vector<2x8x16xf32>
    "tpu.trace_stop"() : () -> ()
    %254 = vector.shape_cast %253 : vector<2x8x16xf32> to vector<16x16xf32>
    %255 = arith.truncf %254 : vector<16x16xf32> to vector<16x16xbf16>
    %c2_140 = arith.constant 2 : index
    %c0_141 = arith.constant 0 : index
    %c0_142 = arith.constant 0 : index
    %256 = vector.load %arg11[%c2_140, %c0_141, %c0_142] : memref<4x16x32xbf16, #tpu.memory_space<vmem>>, vector<1x16x32xbf16>
    %257 = vector.shape_cast %256 : vector<1x16x32xbf16> to vector<16x32xbf16>
    %cst_143 = arith.constant dense<0.000000e+00> : vector<16x32xf32>
    %258 = tpu.matmul %255, %257, %cst_143 {dimension_numbers = #tpu.dot_dimension_numbers<[1], [0], [0], [1], [0, 0, 1, 1], [], []>} : vector<16x16xbf16>, vector<16x32xbf16>, vector<16x32xf32> -> vector<16x32xf32>
    %259 = arith.addf %212, %258 : vector<16x32xf32>
    %c3 = arith.constant 3 : index
    %c0_144 = arith.constant 0 : index
    %c0_145 = arith.constant 0 : index
    %260 = vector.load %arg5[%c3, %c0_144, %c0_145] : memref<4x32x16xbf16, #tpu.memory_space<vmem>>, vector<1x32x16xbf16>
    %261 = vector.shape_cast %260 : vector<1x32x16xbf16> to vector<32x16xbf16>
    %cst_146 = arith.constant dense<0.000000e+00> : vector<16x16xf32>
    %262 = tpu.matmul %211, %261, %cst_146 {dimension_numbers = #tpu.dot_dimension_numbers<[1], [0], [0], [1], [0, 0, 1, 1], [], []>} : vector<16x32xbf16>, vector<32x16xbf16>, vector<16x16xf32> -> vector<16x16xf32>
    %c3_147 = arith.constant 3 : index
    %c0_148 = arith.constant 0 : index
    %c0_149 = arith.constant 0 : index
    %263 = vector.load %arg6[%c3_147, %c0_148, %c0_149] : memref<4x1x16xf32, #tpu.memory_space<vmem>>, vector<1x1x16xf32>
    %264 = vector.shape_cast %263 : vector<1x1x16xf32> to vector<1x16xf32>
    %265 = vector.broadcast %264 : vector<1x16xf32> to vector<16x16xf32>
    %266 = arith.addf %262, %265 : vector<16x16xf32>
    %c3_150 = arith.constant 3 : index
    %c0_151 = arith.constant 0 : index
    %c0_152 = arith.constant 0 : index
    %267 = vector.load %arg7[%c3_150, %c0_151, %c0_152] : memref<4x32x16xbf16, #tpu.memory_space<vmem>>, vector<1x32x16xbf16>
    %268 = vector.shape_cast %267 : vector<1x32x16xbf16> to vector<32x16xbf16>
    %cst_153 = arith.constant dense<0.000000e+00> : vector<16x16xf32>
    %269 = tpu.matmul %211, %268, %cst_153 {dimension_numbers = #tpu.dot_dimension_numbers<[1], [0], [0], [1], [0, 0, 1, 1], [], []>} : vector<16x32xbf16>, vector<32x16xbf16>, vector<16x16xf32> -> vector<16x16xf32>
    %c3_154 = arith.constant 3 : index
    %c0_155 = arith.constant 0 : index
    %c0_156 = arith.constant 0 : index
    %270 = vector.load %arg8[%c3_154, %c0_155, %c0_156] : memref<4x1x16xf32, #tpu.memory_space<vmem>>, vector<1x1x16xf32>
    %271 = vector.shape_cast %270 : vector<1x1x16xf32> to vector<1x16xf32>
    %272 = vector.broadcast %271 : vector<1x16xf32> to vector<16x16xf32>
    %273 = arith.addf %269, %272 : vector<16x16xf32>
    %c3_157 = arith.constant 3 : index
    %c0_158 = arith.constant 0 : index
    %c0_159 = arith.constant 0 : index
    %274 = vector.load %arg9[%c3_157, %c0_158, %c0_159] : memref<4x32x16xbf16, #tpu.memory_space<vmem>>, vector<1x32x16xbf16>
    %275 = vector.shape_cast %274 : vector<1x32x16xbf16> to vector<32x16xbf16>
    %cst_160 = arith.constant dense<0.000000e+00> : vector<16x16xf32>
    %276 = tpu.matmul %211, %275, %cst_160 {dimension_numbers = #tpu.dot_dimension_numbers<[1], [0], [0], [1], [0, 0, 1, 1], [], []>} : vector<16x32xbf16>, vector<32x16xbf16>, vector<16x16xf32> -> vector<16x16xf32>
    %c3_161 = arith.constant 3 : index
    %c0_162 = arith.constant 0 : index
    %c0_163 = arith.constant 0 : index
    %277 = vector.load %arg10[%c3_161, %c0_162, %c0_163] : memref<4x1x16xf32, #tpu.memory_space<vmem>>, vector<1x1x16xf32>
    %278 = vector.shape_cast %277 : vector<1x1x16xf32> to vector<1x16xf32>
    %279 = vector.broadcast %278 : vector<1x16xf32> to vector<16x16xf32>
    %280 = arith.addf %276, %279 : vector<16x16xf32>
    %281 = arith.truncf %266 : vector<16x16xf32> to vector<16x16xbf16>
    %282 = vector.shape_cast %281 : vector<16x16xbf16> to vector<2x8x16xbf16>
    %283 = arith.truncf %273 : vector<16x16xf32> to vector<16x16xbf16>
    %284 = vector.shape_cast %283 : vector<16x16xbf16> to vector<2x8x16xbf16>
    %285 = arith.truncf %280 : vector<16x16xf32> to vector<16x16xbf16>
    %286 = vector.shape_cast %285 : vector<16x16xbf16> to vector<2x8x16xbf16>
    "tpu.trace_start"() <{level = 10 : i32, message = "bqd,bkd->bqk"}> : () -> ()
    %cst_164 = arith.constant dense<0.000000e+00> : vector<2x8x8xf32>
    %287 = tpu.matmul %282, %284, %cst_164 {dimension_numbers = #tpu.dot_dimension_numbers<[2], [2], [1], [1], [0, 0, 0, 1, 1, 1], [0], [0]>} : vector<2x8x16xbf16>, vector<2x8x16xbf16>, vector<2x8x8xf32> -> vector<2x8x8xf32>
    "tpu.trace_stop"() : () -> ()
    %288 = arith.addf %287, %1 : vector<2x8x8xf32>
    %cst_165 = arith.constant dense<0xFF800000> : vector<2x8xf32>
    %289 = vector.multi_reduction <maximumf>, %288, %cst_165 [2] : vector<2x8x8xf32> to vector<2x8xf32>
    %290 = vector.shape_cast %289 : vector<2x8xf32> to vector<2x8x1xf32>
    %291 = vector.broadcast %290 : vector<2x8x1xf32> to vector<2x8x8xf32>
    %292 = arith.subf %288, %291 : vector<2x8x8xf32>
    %293 = math.exp %292 : vector<2x8x8xf32>
    %cst_166 = arith.constant dense<0.000000e+00> : vector<2x8xf32>
    %294 = vector.multi_reduction <add>, %293, %cst_166 [2] : vector<2x8x8xf32> to vector<2x8xf32>
    %295 = vector.shape_cast %294 : vector<2x8xf32> to vector<2x8x1xf32>
    %296 = tpu.reciprocal %295 {approx = true} : vector<2x8x1xf32> -> vector<2x8x1xf32>
    %297 = vector.broadcast %296 : vector<2x8x1xf32> to vector<2x8x8xf32>
    %298 = arith.mulf %293, %297 : vector<2x8x8xf32>
    %299 = arith.truncf %298 : vector<2x8x8xf32> to vector<2x8x8xbf16>
    "tpu.trace_start"() <{level = 10 : i32, message = "bqk,bkd->bqd"}> : () -> ()
    %cst_167 = arith.constant dense<0.000000e+00> : vector<2x8x16xf32>
    %300 = tpu.matmul %299, %286, %cst_167 {dimension_numbers = #tpu.dot_dimension_numbers<[2], [1], [1], [2], [0, 0, 0, 1, 1, 2], [0], [0]>} : vector<2x8x8xbf16>, vector<2x8x16xbf16>, vector<2x8x16xf32> -> vector<2x8x16xf32>
    "tpu.trace_stop"() : () -> ()
    %301 = vector.shape_cast %300 : vector<2x8x16xf32> to vector<16x16xf32>
    %302 = arith.truncf %301 : vector<16x16xf32> to vector<16x16xbf16>
    %c3_168 = arith.constant 3 : index
    %c0_169 = arith.constant 0 : index
    %c0_170 = arith.constant 0 : index
    %303 = vector.load %arg11[%c3_168, %c0_169, %c0_170] : memref<4x16x32xbf16, #tpu.memory_space<vmem>>, vector<1x16x32xbf16>
    %304 = vector.shape_cast %303 : vector<1x16x32xbf16> to vector<16x32xbf16>
    %cst_171 = arith.constant dense<0.000000e+00> : vector<16x32xf32>
    %305 = tpu.matmul %302, %304, %cst_171 {dimension_numbers = #tpu.dot_dimension_numbers<[1], [0], [0], [1], [0, 0, 1, 1], [], []>} : vector<16x16xbf16>, vector<16x32xbf16>, vector<16x32xf32> -> vector<16x32xf32>
    %306 = arith.addf %259, %305 : vector<16x32xf32>
    %307 = arith.addf %184, %306 : vector<16x32xf32>
    %c1_172 = arith.constant 1 : index
    %c0_173 = arith.constant 0 : index
    %c0_174 = arith.constant 0 : index
    %308 = vector.load %arg12[%c1_172, %c0_173, %c0_174] : memref<2x1x32xf32, #tpu.memory_space<vmem>>, vector<1x1x32xf32>
    %309 = vector.shape_cast %308 : vector<1x1x32xf32> to vector<1x32xf32>
    %310 = vector.broadcast %309 : vector<1x32xf32> to vector<16x32xf32>
    %311 = arith.addf %307, %310 : vector<16x32xf32>
    %c1_175 = arith.constant 1 : index
    %c0_176 = arith.constant 0 : index
    %c0_177 = arith.constant 0 : index
    %312 = vector.load %arg13[%c1_175, %c0_176, %c0_177] : memref<2x1x32xf32, #tpu.memory_space<vmem>>, vector<1x1x32xf32>
    %313 = vector.shape_cast %312 : vector<1x1x32xf32> to vector<1x32xf32>
    %c1_178 = arith.constant 1 : index
    %c0_179 = arith.constant 0 : index
    %c0_180 = arith.constant 0 : index
    %314 = vector.load %arg14[%c1_178, %c0_179, %c0_180] : memref<2x1x32xf32, #tpu.memory_space<vmem>>, vector<1x1x32xf32>
    %315 = vector.shape_cast %314 : vector<1x1x32xf32> to vector<1x32xf32>
    %cst_181 = arith.constant dense<0.000000e+00> : vector<16xf32>
    %316 = vector.multi_reduction <add>, %311, %cst_181 [1] : vector<16x32xf32> to vector<16xf32>
    %317 = vector.shape_cast %316 : vector<16xf32> to vector<16x1xf32>
    %cst_182 = arith.constant 3.200000e+01 : f32
    %318 = vector.broadcast %cst_182 : f32 to vector<16x1xf32>
    %319 = arith.divf %317, %318 : vector<16x1xf32>
    %320 = vector.broadcast %319 : vector<16x1xf32> to vector<16x32xf32>
    %321 = arith.subf %311, %320 : vector<16x32xf32>
    %322 = arith.mulf %321, %321 : vector<16x32xf32>
    %cst_183 = arith.constant dense<0.000000e+00> : vector<16xf32>
    %323 = vector.multi_reduction <add>, %322, %cst_183 [1] : vector<16x32xf32> to vector<16xf32>
    %324 = vector.shape_cast %323 : vector<16xf32> to vector<16x1xf32>
    %cst_184 = arith.constant 3.200000e+01 : f32
    %325 = vector.broadcast %cst_184 : f32 to vector<16x1xf32>
    %326 = arith.divf %324, %325 : vector<16x1xf32>
    %327 = vector.broadcast %319 : vector<16x1xf32> to vector<16x32xf32>
    %328 = arith.subf %311, %327 : vector<16x32xf32>
    %cst_185 = arith.constant 9.99999974E-6 : f32
    %329 = vector.broadcast %cst_185 : f32 to vector<16x1xf32>
    %330 = arith.addf %326, %329 : vector<16x1xf32>
    %331 = math.rsqrt %330 : vector<16x1xf32>
    %332 = vector.broadcast %331 : vector<16x1xf32> to vector<16x32xf32>
    %333 = arith.mulf %328, %332 : vector<16x32xf32>
    %334 = vector.broadcast %313 : vector<1x32xf32> to vector<16x32xf32>
    %335 = arith.mulf %333, %334 : vector<16x32xf32>
    %336 = vector.broadcast %315 : vector<1x32xf32> to vector<16x32xf32>
    %337 = arith.addf %335, %336 : vector<16x32xf32>
    %338 = arith.truncf %337 : vector<16x32xf32> to vector<16x32xbf16>
    %c1_186 = arith.constant 1 : index
    %c0_187 = arith.constant 0 : index
    %c0_188 = arith.constant 0 : index
    %339 = vector.load %arg15[%c1_186, %c0_187, %c0_188] : memref<2x32x64xbf16, #tpu.memory_space<vmem>>, vector<1x32x64xbf16>
    %340 = vector.shape_cast %339 : vector<1x32x64xbf16> to vector<32x64xbf16>
    %cst_189 = arith.constant dense<0.000000e+00> : vector<16x64xf32>
    %341 = tpu.matmul %338, %340, %cst_189 {dimension_numbers = #tpu.dot_dimension_numbers<[1], [0], [0], [1], [0, 0, 1, 1], [], []>} : vector<16x32xbf16>, vector<32x64xbf16>, vector<16x64xf32> -> vector<16x64xf32>
    %c1_190 = arith.constant 1 : index
    %c0_191 = arith.constant 0 : index
    %c0_192 = arith.constant 0 : index
    %342 = vector.load %arg16[%c1_190, %c0_191, %c0_192] : memref<2x1x64xf32, #tpu.memory_space<vmem>>, vector<1x1x64xf32>
    %343 = vector.shape_cast %342 : vector<1x1x64xf32> to vector<1x64xf32>
    %344 = vector.broadcast %343 : vector<1x64xf32> to vector<16x64xf32>
    %345 = arith.addf %341, %344 : vector<16x64xf32>
    %346 = arith.mulf %345, %345 : vector<16x64xf32>
    %347 = arith.mulf %345, %346 : vector<16x64xf32>
    %cst_193 = arith.constant 4.471500e-02 : f32
    %348 = vector.broadcast %cst_193 : f32 to vector<16x64xf32>
    %349 = arith.mulf %348, %347 : vector<16x64xf32>
    %350 = arith.addf %345, %349 : vector<16x64xf32>
    %cst_194 = arith.constant 0.797884583 : f32
    %351 = vector.broadcast %cst_194 : f32 to vector<16x64xf32>
    %352 = arith.mulf %351, %350 : vector<16x64xf32>
    %353 = math.tanh %352 : vector<16x64xf32>
    %cst_195 = arith.constant 1.000000e+00 : f32
    %354 = vector.broadcast %cst_195 : f32 to vector<16x64xf32>
    %355 = arith.addf %354, %353 : vector<16x64xf32>
    %cst_196 = arith.constant 5.000000e-01 : f32
    %356 = vector.broadcast %cst_196 : f32 to vector<16x64xf32>
    %357 = arith.mulf %356, %355 : vector<16x64xf32>
    %358 = arith.mulf %345, %357 : vector<16x64xf32>
    %359 = arith.truncf %358 : vector<16x64xf32> to vector<16x64xbf16>
    %c1_197 = arith.constant 1 : index
    %c0_198 = arith.constant 0 : index
    %c0_199 = arith.constant 0 : index
    %360 = vector.load %arg17[%c1_197, %c0_198, %c0_199] : memref<2x64x32xbf16, #tpu.memory_space<vmem>>, vector<1x64x32xbf16>
    %361 = vector.shape_cast %360 : vector<1x64x32xbf16> to vector<64x32xbf16>
    %cst_200 = arith.constant dense<0.000000e+00> : vector<16x32xf32>
    %362 = tpu.matmul %359, %361, %cst_200 {dimension_numbers = #tpu.dot_dimension_numbers<[1], [0], [0], [1], [0, 0, 1, 1], [], []>} : vector<16x64xbf16>, vector<64x32xbf16>, vector<16x32xf32> -> vector<16x32xf32>
    %c1_201 = arith.constant 1 : index
    %c0_202 = arith.constant 0 : index
    %c0_203 = arith.constant 0 : index
    %363 = vector.load %arg18[%c1_201, %c0_202, %c0_203] : memref<2x1x32xf32, #tpu.memory_space<vmem>>, vector<1x1x32xf32>
    %364 = vector.shape_cast %363 : vector<1x1x32xf32> to vector<1x32xf32>
    %365 = vector.broadcast %364 : vector<1x32xf32> to vector<16x32xf32>
    %366 = arith.addf %362, %365 : vector<16x32xf32>
    %367 = arith.addf %311, %366 : vector<16x32xf32>
    %c0_204 = arith.constant 0 : index
    %c0_205 = arith.constant 0 : index
    %368 = vector.load %arg2[%c0_204, %c0_205] : memref<8x16xf32, #tpu.memory_space<vmem>>, vector<8x16xf32>
    %cst_206 = arith.constant dense<0.000000e+00> : vector<8x32xf32>
    %369 = tpu.matmul %368, %367, %cst_206 {dimension_numbers = #tpu.dot_dimension_numbers<[1], [0], [0], [1], [0, 0, 1, 1], [], []>} : vector<8x16xf32>, vector<16x32xf32>, vector<8x32xf32> -> vector<8x32xf32>
    %c0_207 = arith.constant 0 : index
    %c0_208 = arith.constant 0 : index
    %370 = vector.load %arg19[%c0_207, %c0_208] : memref<1x32xf32, #tpu.memory_space<vmem>>, vector<1x32xf32>
    %c0_209 = arith.constant 0 : index
    %c0_210 = arith.constant 0 : index
    %371 = vector.load %arg20[%c0_209, %c0_210] : memref<1x32xf32, #tpu.memory_space<vmem>>, vector<1x32xf32>
    %cst_211 = arith.constant dense<0.000000e+00> : vector<8xf32>
    %372 = vector.multi_reduction <add>, %369, %cst_211 [1] : vector<8x32xf32> to vector<8xf32>
    %373 = vector.shape_cast %372 : vector<8xf32> to vector<8x1xf32>
    %cst_212 = arith.constant 3.200000e+01 : f32
    %374 = vector.broadcast %cst_212 : f32 to vector<8x1xf32>
    %375 = arith.divf %373, %374 : vector<8x1xf32>
    %376 = vector.broadcast %375 : vector<8x1xf32> to vector<8x32xf32>
    %377 = arith.subf %369, %376 : vector<8x32xf32>
    %378 = arith.mulf %377, %377 : vector<8x32xf32>
    %cst_213 = arith.constant dense<0.000000e+00> : vector<8xf32>
    %379 = vector.multi_reduction <add>, %378, %cst_213 [1] : vector<8x32xf32> to vector<8xf32>
    %380 = vector.shape_cast %379 : vector<8xf32> to vector<8x1xf32>
    %cst_214 = arith.constant 3.200000e+01 : f32
    %381 = vector.broadcast %cst_214 : f32 to vector<8x1xf32>
    %382 = arith.divf %380, %381 : vector<8x1xf32>
    %383 = vector.broadcast %375 : vector<8x1xf32> to vector<8x32xf32>
    %384 = arith.subf %369, %383 : vector<8x32xf32>
    %cst_215 = arith.constant 9.99999974E-6 : f32
    %385 = vector.broadcast %cst_215 : f32 to vector<8x1xf32>
    %386 = arith.addf %382, %385 : vector<8x1xf32>
    %387 = math.rsqrt %386 : vector<8x1xf32>
    %388 = vector.broadcast %387 : vector<8x1xf32> to vector<8x32xf32>
    %389 = arith.mulf %384, %388 : vector<8x32xf32>
    %390 = vector.broadcast %370 : vector<1x32xf32> to vector<8x32xf32>
    %391 = arith.mulf %389, %390 : vector<8x32xf32>
    %392 = vector.broadcast %371 : vector<1x32xf32> to vector<8x32xf32>
    %393 = arith.addf %391, %392 : vector<8x32xf32>
    %394 = arith.truncf %393 : vector<8x32xf32> to vector<8x32xbf16>
    %c0_216 = arith.constant 0 : index
    %c0_217 = arith.constant 0 : index
    %395 = vector.load %arg21[%c0_216, %c0_217] : memref<32x32xbf16, #tpu.memory_space<vmem>>, vector<32x32xbf16>
    %cst_218 = arith.constant dense<0.000000e+00> : vector<8x32xf32>
    %396 = tpu.matmul %394, %395, %cst_218 {dimension_numbers = #tpu.dot_dimension_numbers<[1], [0], [0], [1], [0, 0, 1, 1], [], []>} : vector<8x32xbf16>, vector<32x32xbf16>, vector<8x32xf32> -> vector<8x32xf32>
    %c0_219 = arith.constant 0 : index
    %c0_220 = arith.constant 0 : index
    %397 = vector.load %arg22[%c0_219, %c0_220] : memref<1x32xf32, #tpu.memory_space<vmem>>, vector<1x32xf32>
    %398 = vector.broadcast %397 : vector<1x32xf32> to vector<8x32xf32>
    %399 = arith.addf %396, %398 : vector<8x32xf32>
    %400 = math.tanh %399 : vector<8x32xf32>
    %401 = arith.truncf %400 : vector<8x32xf32> to vector<8x32xbf16>
    %c0_221 = arith.constant 0 : index
    %c0_222 = arith.constant 0 : index
    %402 = vector.load %arg23[%c0_221, %c0_222] : memref<32x128xbf16, #tpu.memory_space<vmem>>, vector<32x128xbf16>
    %cst_223 = arith.constant dense<0.000000e+00> : vector<8x128xf32>
    %403 = tpu.matmul %401, %402, %cst_223 {dimension_numbers = #tpu.dot_dimension_numbers<[1], [0], [0], [1], [0, 0, 1, 1], [], []>} : vector<8x32xbf16>, vector<32x128xbf16>, vector<8x128xf32> -> vector<8x128xf32>
    %c0_224 = arith.constant 0 : index
    %c0_225 = arith.constant 0 : index
    %404 = vector.load %arg24[%c0_224, %c0_225] : memref<1x128xf32, #tpu.memory_space<vmem>>, vector<1x128xf32>
    %405 = vector.broadcast %404 : vector<1x128xf32> to vector<8x128xf32>
    %406 = arith.addf %403, %405 : vector<8x128xf32>
    %c0_226 = arith.constant 0 : index
    %c0_227 = arith.constant 0 : index
    %407 = vector.load %arg25[%c0_226, %c0_227] : memref<8x128xf32, #tpu.memory_space<vmem>>, vector<8x128xf32>
    tpu.vector_store %arg25[%c0_226, %c0_227], %406 {strides = array<i32>} : memref<8x128xf32, #tpu.memory_space<vmem>>, vector<8x128xf32>,
    return
  }
}

</mosaic_0001>

<bundles_post_ra>
// kernel: finetune_esm_forward.1
= control target key start
LH: loop header
LB: loop body
LE: loop exit
PB: predicated region body
PF: predicated region fallthrough
CT: control target
= control target key end

     0   :  { %vm87_vm0 = vcmask 261120   ;;  %v2093_v4 = vmov 32.0   ;;  %vm261_vm8 = vcmask 130048   ;;  %vm328_vm9 = vcmask 1043456   ;;  %s2641_s0 = inlined_call_operand.vmem [shape: f32[16,32], index: 0, kind: input, shape index: {}]   ;;  %s2642_s3 = inlined_call_operand.vmem [shape: f32[2,1,32], index: 3, kind: input, shape index: {}]   ;;  %s2643_s4 = inlined_call_operand.vmem [shape: f32[2,1,32], index: 4, kind: input, shape index: {}]   ;;  %s2644_s6 = inlined_call_operand.vmem [shape: f32[4,1,16], index: 6, kind: input, shape index: {}]   ;;  %s2645_s5 = inlined_call_operand.vmem [shape: bf16[4,32,16], index: 5, kind: input, shape index: {}]   ;;  %s2646_s7 = inlined_call_operand.vmem [shape: bf16[4,32,16], index: 7, kind: input, shape index: {}]   ;;  %s2647_s9 = inlined_call_operand.vmem [shape: bf16[4,32,16], index: 9, kind: input, shape index: {}]   ;;  %s2648_s8 = inlined_call_operand.vmem [shape: f32[4,1,16], index: 8, kind: input, shape index: {}]   ;;  %s2649_s10 = inlined_call_operand.vmem [shape: f32[4,1,16], index: 10, kind: input, shape index: {}]   ;;  %s2650_s1 = inlined_call_operand.vmem [shape: f32[2,8,8], index: 1, kind: input, shape index: {}]   ;;  %s2651_s11 = inlined_call_operand.vmem [shape: bf16[4,16,32], index: 11, kind: input, shape index: {}]   ;;  %s2652_s12 = inlined_call_operand.vmem [shape: f32[2,1,32], index: 12, kind: input, shape index: {}]   ;;  %s2653_s13 = inlined_call_operand.vmem [shape: f32[2,1,32], index: 13, kind: input, shape index: {}]   ;;  %s2654_s14 = inlined_call_operand.vmem [shape: f32[2,1,32], index: 14, kind: input, shape index: {}]   ;;  %s2655_s16 = inlined_call_operand.vmem [shape: f32[2,1,64], index: 16, kind: input, shape index: {}]   ;;  %s2656_s15 = inlined_call_operand.vmem [shape: bf16[2,32,64], index: 15, kind: input, shape index: {}]   ;;  %s2657_s18 = inlined_call_operand.vmem [shape: f32[2,1,32], index: 18, kind: input, shape index: {}]   ;;  %s2658_s17 = inlined_call_operand.vmem [shape: bf16[2,64,32], index: 17, kind: input, shape index: {}]   ;;  %s2659_s2 = inlined_call_operand.vmem [shape: f32[8,16], index: 2, kind: input, shape index: {}]   ;;  %s2660_s19 = inlined_call_operand.vmem [shape: f32[1,32], index: 19, kind: input, shape index: {}]   ;;  %s2661_s20 = inlined_call_operand.vmem [shape: f32[1,32], index: 20, kind: input, shape index: {}]   ;;  %s2662_s22 = inlined_call_operand.vmem [shape: f32[1,32], index: 22, kind: input, shape index: {}]   ;;  %s2663_s21 = inlined_call_operand.vmem [shape: bf16[32,32], index: 21, kind: input, shape index: {}]   ;;  %s2664_s24 = inlined_call_operand.vmem [shape: f32[1,128], index: 24, kind: input, shape index: {}]   ;;  %s2665_s23 = inlined_call_operand.vmem [shape: bf16[32,128], index: 23, kind: input, shape index: {}]   ;;  %s2666_s25 = inlined_call_operand.vmem [shape: f32[8,128], index: 25, kind: output, shape index: {}]  }
   0x1   :  { %2677 = sst [smem:[#allocation2_spill]] %s2641_s0  ;;  %2031 = vrcp.f32 %v2093_v4  ;;  %vm300_vm10 = vcmask 64512  }
   0x2   :  { %2678 = sst [smem:[#allocation3_spill]] %s2642_s3 }
   0x3   :  { %2679 = sst [smem:[#allocation4_spill]] %s2643_s4 }
   0x4   :  { %2680 = sst [smem:[#allocation5_spill]] %s2644_s6 }
   0x5   :  { %2681 = sst [smem:[#allocation6_spill]] %s2645_s5 }
   0x6   :  { %2682 = sst [smem:[#allocation7_spill]] %s2646_s7 }
   0x7   :  { %2683 = sst [smem:[#allocation8_spill]] %s2647_s9  ;;  %v2032_v5 = vpop.eup %2031 }
   0x8   :  { %2684 = sst [smem:[#allocation9_spill]] %s2648_s8  ;;  %v95_v6 = vmul.f32 32.0, %v2032_v5  ;;  %vm99_vm1 = vweird.f32 %v2032_v5 }
   0x9   :  { %2685 = sst [smem:[#allocation10_spill]] %s2649_s10 }
   0xa   :  { %2686 = sst [smem:[#allocation11_spill]] %s2650_s1  ;;  %v96_v7 = vsub.f32 1.0, %v95_v6 }
   0xb   :  { %2687 = sst [smem:[#allocation12_spill]] %s2662_s22 }
   0xc   :  { %2688 = sst [smem:[#allocation13_spill]] %s2664_s24  ;;  %v97_v8 = vmul.f32 %v2032_v5, %v96_v7 }
   0xd   :  { %2689 = sst [smem:[#allocation14_spill]] %s2666_s25 }
   0xe   :  { %s2690_s9 = sld [smem:[#allocation2_spill]]  ;;  %v98_v9 = vadd.f32 %v2032_v5, %v97_v8 }
   0xf   :  { %s2691_s3 = sld [smem:[#allocation6_spill]] }
  0x10   :  { %v2238_v10 = vsel %vm99_vm1, %v2032_v5, %v98_v9  ;;  %s2692_s1 = sld [smem:[#allocation7_spill]] }
  0x11   :  { %s2693_s7 = sld [smem:[#allocation8_spill]] }
  0x12   :  { %s2694_s10 = sld [smem:[#allocation3_spill]] }
  0x13   :  { %s2695_s28 = sld [smem:[#allocation4_spill]] }
  0x14   :  { %v2227_v0 = vld [vmem:[%s2690_s9] sm:$0xff]  ;;  %v2234_v2 = vld [vmem:[%s2690_s9 + $0x8] sm:$0xff]  ;;  %s2696_s4 = sld [smem:[#allocation9_spill]] }
  0x15   :  { %v88_v1 = vsel %vm87_vm0, %v2227_v0, 0.0  ;;  %v91_v3 = vsel %vm87_vm0, %v2234_v2, 0.0  ;;  %v1957_v21 = vld [vmem:[%s2691_s3 + $0x8] sm:$0xff]  ;;  %v1956_v26 = vld [vmem:[%s2691_s3] sm:$0xff]  ;;  %s2697_s8 = sld [smem:[#allocation5_spill]]  ;;  %v1964_v62 = vld [vmem:[%s2691_s3 + $0x18] sm:$0xff] }
  0x16   :  { %89 = vadd.xlane.f32.xlu0 %v88_v1  ;;  %v1959_v22 = vld [vmem:[%s2692_s1 + $0x8] sm:$0xff]  ;;  %179 = vmatpush.bf16.msra.mxu0 %v1957_v21  ;;  %v1958_v27 = vld [vmem:[%s2692_s1] sm:$0xff]  ;;  %s2698_s25 = sld [smem:[#allocation10_spill]]  ;;  %v1963_v5 = vld [vmem:[%s2691_s3 + $0x10] sm:$0xff] }
  0x17   :  { %v1961_v23 = vld [vmem:[%s2693_s7 + $0x8] sm:$0xff]  ;;  %213 = vmatpush.bf16.msra.mxu1 %v1959_v22  ;;  %v1960_v28 = vld [vmem:[%s2693_s7] sm:$0xff]  ;;  %s2699_s0 = sld [smem:[#allocation11_spill]] }
  0x18   :  { %247 = vmatpush.bf16.msra.mxu2 %v1961_v23  ;;  %v2001_v45 = vld [vmem:[%s2694_s10] ss:$0 sm:$0xff] }
  0x19   :  { %v2002_v49 = vld [vmem:[%s2695_s28] ss:$0 sm:$0xff] }
  0x1a   :  { %180 = vmatpush.bf16.msra.mxu0 %v1956_v26  ;;  %v2004_v56 = vld [vmem:[%s2696_s4] ss:$0 sm:$0xff] }
  0x1b   :  { %214 = vmatpush.bf16.msra.mxu1 %v1958_v27  ;;  %v2003_v60 = vld [vmem:[%s2697_s8] ss:$0 sm:$0xff] }
  0x1c   :  { %248 = vmatpush.bf16.msra.mxu2 %v1960_v28  ;;  %v2005_v63 = vld [vmem:[%s2698_s25] ss:$0 sm:$0xff] }
  0x1d   :  { %v2319_v26 = vld [vmem:[%s2699_s0 + $0x8] sm:$0xff] }
  0x1e   :  { %92 = vadd.xlane.f32.xlu0 %v91_v3 }
  0x89   :  { %v90_v11 = vpop.xlane.xlu0 %89 }
  0x8a   :  { %v101_v12 = vmul.f32 %v2238_v10, %v90_v11 }
  0x8c   :  { %v103_v13 = vsub.f32 %v2227_v0, %v101_v12 }
  0x8e   :  { %v105_v14 = vmul.f32 %v103_v13, %v103_v13 }
  0x90   :  { %v107_v15 = vsel %vm87_vm0, %v105_v14, 0.0 }
  0x91   :  { %108 = vadd.xlane.f32.xlu1 %v107_v15  ;;  %v93_v16 = vpop.xlane.xlu0 %92 }
  0x92   :  { %v102_v17 = vmul.f32 %v2238_v10, %v93_v16 }
  0x94   :  { %v104_v18 = vsub.f32 %v2234_v2, %v102_v17 }
  0x96   :  { %v106_v19 = vmul.f32 %v104_v18, %v104_v18 }
  0x98   :  { %v110_v20 = vsel %vm87_vm0, %v106_v19, 0.0  ;;  %v1965_v19 = vld [vmem:[%s2692_s1 + $0x10] sm:$0xff] }
  0x99   :  { %111 = vadd.xlane.f32.xlu1 %v110_v20 }
 0x104   :  { %v109_v24 = vpop.xlane.xlu1 %108 }
 0x105   :  { %v113_v25 = vmul.f32 %v109_v24, %v2238_v10  ;;  %v2314_v24 = vld [vmem:[%s2699_s0] sm:$0xff] }
 0x107   :  { %v115_v29 = vadd.f32 1e-05, %v113_v25 }
 0x109   :  { %2033 = vrsqrt.f32 %v115_v29  ;;  %vm123_vm3 = vweird.f32 %v115_v29 }
 0x10c   :  { %v112_v30 = vpop.xlane.xlu1 %111 }
 0x10d   :  { %v114_v31 = vmul.f32 %v112_v30, %v2238_v10 }
 0x10f   :  { %v2034_v32 = vpop.eup %2033  ;;  %v116_v33 = vadd.f32 1e-05, %v114_v31 }
 0x110   :  { %v118_v34 = vmul.f32 %v2034_v32, %v115_v29  ;;  %vm124_vm2 = vweird.f32 %v2034_v32 }
 0x111   :  { %2035 = vrsqrt.f32 %v116_v33  ;;  %vm125_vm4 = vmor %vm123_vm3, %vm124_vm2  ;;  %vm133_vm6 = vweird.f32 %v116_v33  ;;  %vm788_vm2 = vcmask 523264  }
 0x112   :  { %v119_v35 = vmul.f32 %v2034_v32, %v118_v34  ;;  %v2006_v34 = vld [vmem:[%s2697_s8 + $0x1] ss:$0 sm:$0xff] }
 0x114   :  { %v120_v36 = vmul.f32 0.5, %v119_v35  ;;  %v2007_v35 = vld [vmem:[%s2696_s4 + $0x1] ss:$0 sm:$0xff] }
 0x116   :  { %v121_v37 = vsub.f32 1.5, %v120_v36 }
 0x117   :  { %v2036_v38 = vpop.eup %2035 }
 0x118   :  { %v122_v39 = vmul.f32 %v2034_v32, %v121_v37  ;;  %v128_v40 = vmul.f32 %v2036_v38, %v116_v33  ;;  %vm134_vm5 = vweird.f32 %v2036_v38 }
 0x119   :  { %vm135_vm7 = vmor %vm133_vm6, %vm134_vm5 }
 0x11a   :  { %v129_v41 = vmul.f32 %v2036_v38, %v128_v40  ;;  %v126_v42 = vsel %vm125_vm4, %v2034_v32, %v122_v39 }
 0x11b   :  { %v137_v46 = vmul.f32 %v126_v42, %v103_v13  ;;  %v1966_v13 = vld [vmem:[%s2692_s1 + $0x18] sm:$0xff] }
 0x11c   :  { %v130_v43 = vmul.f32 0.5, %v129_v41 }
 0x11d   :  { %v142_v50 = vmul.f32 %v2001_v45, %v137_v46 }
 0x11e   :  { %v131_v44 = vsub.f32 1.5, %v130_v43 }
 0x11f   :  { %v147_v53 = vadd.f32 %v2002_v49, %v142_v50 }
 0x120   :  { %v132_v47 = vmul.f32 %v2036_v38, %v131_v44 }
 0x122   :  { %v136_v48 = vsel %vm135_vm7, %v2036_v38, %v132_v47 }
 0x123   :  { %v138_v51 = vmul.f32 %v136_v48, %v104_v18 }
 0x125   :  { %v143_v52 = vmul.f32 %v2001_v45, %v138_v51 }
 0x127   :  { %v148_v54 = vadd.f32 %v2002_v49, %v143_v52 }
 0x129   :  { %v2272_v55 = vpack.c.bf16 %v148_v54, %v147_v53 }
 0x12b   :  { %1679 = vmatmul.msk.bf16.vlgmr.msra.gmra.mxu0 %vm87_vm0, %v2272_v55  ;;  %1688 = vmatmul.msk.bf16.vlgmr.msra.gmra.mxu1 %vm87_vm0, %v2272_v55 }
 0x12c   :  { %1697 = vmatmul.msk.bf16.vlgmr.msra.gmra.mxu2 %vm87_vm0, %v2272_v55 }
 0x1a8   :  { %v216_v57 = vpop.f32.mrf.mxu1  ;;  %v182_v59 = vpop.f32.mrf.mxu0 }
 0x1a9   :  { %v217_v58 = vadd.f32 %v2004_v56, %v216_v57  ;;  %v183_v3 = vadd.f32 %v2003_v60, %v182_v59 }
 0x1ab   :  { %v257_v61 = vpack.c.bf16 %v217_v58, %v217_v58  ;;  %v255_v11 = vpack.c.bf16 %v183_v3, %v183_v3  ;;  %v1967_v3 = vld [vmem:[%s2693_s7 + $0x10] sm:$0xff] }
 0x1ad   :  { %v266_v1 = vsel %vm261_vm8, %v257_v61, 0 }
 0x1ae   :  { %275 = vmatpush.bf16.xpose.msra.mxu3 %v266_v1  ;;  %v1968_v1 = vld [vmem:[%s2693_s7 + $0x18] sm:$0xff] }
 0x1af   :  { %v250_v4 = vpop.f32.mrf.mxu2 }
 0x1b0   :  { %v251_v6 = vadd.f32 %v2005_v63, %v250_v4  ;;  %v218_v7 = vpop.f32.mrf.mxu1  ;;  %v184_v14 = vpop.f32.mrf.mxu0 }
 0x1b1   :  { %v219_v8 = vadd.f32 %v2004_v56, %v218_v7  ;;  %v185_v17 = vadd.f32 %v2003_v60, %v184_v14  ;;  %v1962_v14 = vld [vmem:[%s2651_s11] sm:$0xff] }
 0x1b2   :  { %v259_v9 = vpack.c.bf16 %v251_v6, %v251_v6 }
 0x1b3   :  { %v258_v12 = vpack.c.bf16 %v219_v8, %v219_v8  ;;  %v256_v22 = vpack.c.bf16 %v185_v17, %v185_v17 }
 0x1b4   :  { %v330_v15 = vsel %vm328_vm9, %v259_v9, 0 }
 0x1b5   :  { %339 = vmatpush.bf16.msrb.mxu1 %v330_v15  ;;  %1698 = vmatmul.msk.bf16.vlgmr.msra.gmra.mxu3 %vm261_vm8, %v255_v11  ;;  %v285_v16 = vsel %vm261_vm8, %v258_v12, 0 }
 0x1b6   :  { %395 = vmatpush.bf16.msrb.mxu3 %v1964_v62  ;;  %294 = vmatpush.bf16.xpose.msrb.mxu0 %v285_v16 }
 0x1b7   :  { %v252_v18 = vpop.f32.mrf.mxu2 }
 0x1b8   :  { %v253_v20 = vadd.f32 %v2005_v63, %v252_v18 }
 0x1b9   :  { %467 = vmatpush.bf16.msra.mxu1 %v1968_v1 }
 0x1ba   :  { %396 = vmatpush.bf16.msrb.mxu3 %v1963_v5  ;;  %v260_v21 = vpack.c.bf16 %v253_v20, %v253_v20 }
 0x1bc   :  { %v349_v23 = vsel %vm328_vm9, %v260_v21, 0 }
 0x1bd   :  { %358 = vmatpush.bf16.msrb.mxu2 %v349_v23  ;;  %1699 = vmatmul.msk.bf16.vlgmr.msrb.gmra.mxu0 %vm261_vm8, %v256_v22 }
 0x1be   :  { %431 = vmatpush.bf16.msra.mxu0 %v1966_v13  ;;  %468 = vmatpush.bf16.msra.mxu1 %v1967_v3 }
 0x1c2   :  { %432 = vmatpush.bf16.msra.mxu0 %v1965_v19  ;;  %v2008_v19 = vld [vmem:[%s2698_s25 + $0x1] ss:$0 sm:$0xff] }
 0x1c5   :  { %1715 = vmatmul.msk.bf16.vlgmr.msrb.gmra.mxu3 %vm87_vm0, %v2272_v55 }
 0x1cd   :  { %1729 = vmatmul.msk.bf16.vlgmr.msra.gmra.mxu0 %vm87_vm0, %v2272_v55 }
 0x238   :  { %v277_v25 = vpop.f32.mrf.mxu3 }
 0x239   :  { %v278_v27 = vadd.f32 %v277_v25, %v2314_v24 }
 0x23a   :  { %v296_v28 = vpop.f32.mrf.mxu0 }
 0x23b   :  { %v297_v29 = vadd.f32 %v296_v28, %v2319_v26  ;;  %v301_v30 = vsel %vm300_vm10, %v278_v27, -inf }
 0x23c   :  { %302 = vmax.xlane.f32.xlu0 %v301_v30 }
 0x23d   :  { %v304_v31 = vsel %vm300_vm10, %v297_v29, -inf }
 0x23e   :  { %305 = vmax.xlane.f32.xlu2 %v304_v31 }
 0x240   :  { %v279_v32 = vpop.f32.mrf.mxu3 }
 0x242   :  { %v298_v33 = vpop.f32.mrf.mxu0 }
 0x248   :  { %v398_v36 = vpop.f32.mrf.mxu3 }
 0x249   :  { %v399_v37 = vadd.f32 %v2006_v34, %v398_v36 }
 0x24a   :  { %v434_v38 = vpop.f32.mrf.mxu0 }
 0x24b   :  { %v435_v39 = vadd.f32 %v2007_v35, %v434_v38  ;;  %v475_v13 = vpack.c.bf16 %v399_v37, %v399_v37 }
 0x24d   :  { %v477_v40 = vpack.c.bf16 %v435_v39, %v435_v39 }
 0x24f   :  { %v485_v41 = vsel %vm261_vm8, %v477_v40, 0 }
 0x250   :  { %494 = vmatpush.bf16.xpose.msra.mxu2 %v485_v41  ;;  %v400_v45 = vpop.f32.mrf.mxu3 }
 0x251   :  { %v401_v47 = vadd.f32 %v2006_v34, %v400_v45 }
 0x252   :  { %v436_v42 = vpop.f32.mrf.mxu0 }
 0x253   :  { %v437_v43 = vadd.f32 %v2007_v35, %v436_v42  ;;  %v476_v48 = vpack.c.bf16 %v401_v47, %v401_v47 }
 0x255   :  { %v478_v44 = vpack.c.bf16 %v437_v43, %v437_v43 }
 0x257   :  { %v504_v46 = vsel %vm261_vm8, %v478_v44, 0 }
 0x258   :  { %513 = vmatpush.bf16.xpose.msra.mxu3 %v504_v46 }
 0x25f   :  { %1745 = vmatmul.msk.bf16.vlgmr.msra.gmra.mxu3 %vm261_vm8, %v476_v48 }
 0x260   :  { %624 = vmatpush.bf16.msrb.mxu3 %v1962_v14 }
 0x2af   :  { %v303_v49 = vpop.xlane.xlu0 %302 }
 0x2b0   :  { %v307_v50 = vsub.f32 %v278_v27, %v303_v49 }
 0x2b1   :  { %v306_v51 = vpop.xlane.xlu2 %305 }
 0x2b2   :  { %v309_v52 = vmul.f32 1.442695, %v307_v50  ;;  %v308_v53 = vsub.f32 %v297_v29, %v306_v51 }
 0x2b4   :  { %2037 = vpow2.f32 %v309_v52  ;;  %v311_v54 = vmul.f32 1.442695, %v308_v53 }
 0x2b6   :  { %2039 = vpow2.f32 %v311_v54  ;;  %v1969_v54 = vld [vmem:[%s2651_s11 + $0x8] sm:$0xff] }
 0x2ba   :  { %v2038_v56 = vpop.eup %2037 }
 0x2bb   :  { %v313_v57 = vsel %vm300_vm10, %v2038_v56, 0.0 }
 0x2bc   :  { %v2040_v58 = vpop.eup %2039  ;;  %314 = vadd.xlane.f32.xlu1 %v313_v57 }
 0x2bd   :  { %v316_v59 = vsel %vm300_vm10, %v2040_v58, 0.0 }
 0x2be   :  { %317 = vadd.xlane.f32.xlu2 %v316_v59 }
 0x2e2   :  { %v515_v60 = vpop.f32.mrf.mxu3 }
 0x2e3   :  { %v516_v61 = vadd.f32 %v515_v60, %v2319_v26 }
 0x2e5   :  { %v522_v62 = vsel %vm300_vm10, %v516_v61, -inf }
 0x2e6   :  { %523 = vmax.xlane.f32.xlu0 %v522_v62  ;;  %v2009_v62 = vld [vmem:[%s2652_s12] ss:$0 sm:$0xff] }
 0x2ea   :  { %v517_v63 = vpop.f32.mrf.mxu3 }
 0x32f   :  { %v315_v4 = vpop.xlane.xlu1 %314 }
 0x330   :  { %2041 = vrcp.f32 %v315_v4 }
 0x331   :  { %v318_v5 = vpop.xlane.xlu2 %317 }
 0x332   :  { %2043 = vrcp.f32 %v318_v5 }
 0x336   :  { %v2042_v6 = vpop.eup %2041 }
 0x337   :  { %v321_v7 = vmul.f32 %v2042_v6, %v2038_v56 }
 0x338   :  { %v2044_v8 = vpop.eup %2043 }
 0x339   :  { %v322_v9 = vmul.f32 %v2044_v8, %v2040_v58  ;;  %v323_v11 = vpack.c.bf16 %v321_v7, %v321_v7 }
 0x33b   :  { %1700 = vmatmul.msk.bf16.vlgmr.msrb.gmra.mxu1 %vm300_vm10, %v323_v11  ;;  %v324_v12 = vpack.c.bf16 %v322_v9, %v322_v9 }
 0x33d   :  { %1701 = vmatmul.msk.bf16.vlgmr.msrb.gmra.mxu2 %vm300_vm10, %v324_v12 }
 0x33e   :  { %601 = vmatpush.bf16.msrb.mxu2 %v1969_v54  ;;  %v2012_v54 = vld [vmem:[%s2655_s16] ss:$0 sm:$0xff] }
 0x34b   :  { %1743 = vmatmul.msk.bf16.vlgmr.msra.gmra.mxu1 %vm87_vm0, %v2272_v55 }
 0x34d   :  { %1744 = vmatmul.msk.bf16.vlgmr.msra.gmra.mxu2 %vm261_vm8, %v475_v13 }
 0x359   :  { %v524_v20 = vpop.xlane.xlu0 %523 }
 0x35a   :  { %v526_v23 = vsub.f32 %v516_v61, %v524_v20 }
 0x35c   :  { %v529_v28 = vmul.f32 1.442695, %v526_v23 }
 0x35e   :  { %2045 = vpow2.f32 %v529_v28 }
 0x364   :  { %v2046_v36 = vpop.eup %2045 }
 0x365   :  { %v534_v38 = vsel %vm300_vm10, %v2046_v36, 0.0 }
 0x3b8   :  { %v341_v15 = vpop.f32.mrf.mxu1 }
 0x3c0   :  { %v343_v16 = vpop.f32.mrf.mxu1  ;;  %v360_v17 = vpop.f32.mrf.mxu2 }
 0x3c1   :  { %v364_v18 = vpack.c.bf16 %v360_v17, %v341_v15 }
 0x3c3   :  { %1759 = vmatmul.msk.bf16.vlgmr.msrb.gmra.mxu3 %vm261_vm8, %v364_v18 }
 0x3c8   :  { %v362_v21 = vpop.f32.mrf.mxu2  ;;  %v470_v55 = vpop.f32.mrf.mxu1 }
 0x3c9   :  { %v471_v22 = vadd.f32 %v2008_v19, %v470_v55 }
 0x3cb   :  { %v479_v25 = vpack.c.bf16 %v471_v22, %v471_v22  ;;  %v1970_v22 = vld [vmem:[%s2656_s15] sm:$0xff] }
 0x3cd   :  { %v547_v27 = vsel %vm328_vm9, %v479_v25, 0 }
 0x3ce   :  { %556 = vmatpush.bf16.msrb.mxu0 %v547_v27 }
 0x3d0   :  { %v472_v29 = vpop.f32.mrf.mxu1  ;;  %v496_v30 = vpop.f32.mrf.mxu2 }
 0x3d1   :  { %v473_v31 = vadd.f32 %v2008_v19, %v472_v29  ;;  %v497_v32 = vadd.f32 %v496_v30, %v2314_v24  ;;  %v1971_v19 = vld [vmem:[%s2656_s15 + $0x8] sm:$0xff] }
 0x3d2   :  { %725 = vmatpush.bf16.msra.mxu0 %v1971_v19  ;;  %v2013_v19 = vld [vmem:[%s2657_s18] ss:$0 sm:$0xff] }
 0x3d3   :  { %v480_v33 = vpack.c.bf16 %v473_v31, %v473_v31  ;;  %v519_v34 = vsel %vm300_vm10, %v497_v32, -inf }
 0x3d4   :  { %520 = vmax.xlane.f32.xlu2 %v519_v34 }
 0x3d5   :  { %v566_v35 = vsel %vm328_vm9, %v480_v33, 0 }
 0x3d6   :  { %575 = vmatpush.bf16.msrb.mxu1 %v566_v35  ;;  %726 = vmatpush.bf16.msra.mxu0 %v1970_v22 }
 0x3d8   :  { %v498_v37 = vpop.f32.mrf.mxu2 }
 0x3dc   :  { %535 = vadd.xlane.f32.xlu2 %v534_v38 }
 0x446   :  { %v626_v59 = vpop.f32.mrf.mxu3 }
 0x447   :  { %v521_v39 = vpop.xlane.xlu2 %520 }
 0x448   :  { %v525_v40 = vsub.f32 %v497_v32, %v521_v39 }
 0x44a   :  { %v527_v41 = vmul.f32 1.442695, %v525_v40  ;;  %v2010_v40 = vld [vmem:[%s2653_s13] ss:$0 sm:$0xff] }
 0x44c   :  { %2047 = vpow2.f32 %v527_v41 }
 0x44e   :  { %v628_v4 = vpop.f32.mrf.mxu3 }
 0x44f   :  { %v536_v42 = vpop.xlane.xlu2 %535 }
 0x450   :  { %2049 = vrcp.f32 %v536_v42 }
 0x452   :  { %v2048_v43 = vpop.eup %2047 }
 0x453   :  { %v531_v44 = vsel %vm300_vm10, %v2048_v43, 0.0 }
 0x454   :  { %532 = vadd.xlane.f32.xlu1 %v531_v44  ;;  %v2011_v44 = vld [vmem:[%s2654_s14] ss:$0 sm:$0xff] }
 0x456   :  { %v2050_v45 = vpop.eup %2049 }
 0x457   :  { %v540_v46 = vmul.f32 %v2050_v45, %v2046_v36 }
 0x459   :  { %v542_v47 = vpack.c.bf16 %v540_v46, %v540_v46 }
 0x45b   :  { %1747 = vmatmul.msk.bf16.vlgmr.msrb.gmra.mxu1 %vm300_vm10, %v542_v47 }
 0x4c7   :  { %v533_v48 = vpop.xlane.xlu1 %532 }
 0x4c8   :  { %2051 = vrcp.f32 %v533_v48 }
 0x4ce   :  { %v2052_v49 = vpop.eup %2051 }
 0x4cf   :  { %v539_v50 = vmul.f32 %v2052_v49, %v2048_v43 }
 0x4d1   :  { %v541_v51 = vpack.c.bf16 %v539_v50, %v539_v50 }
 0x4d3   :  { %1746 = vmatmul.msk.bf16.vlgmr.msrb.gmra.mxu0 %vm300_vm10, %v541_v51  ;;  %v1975_v51 = vld [vmem:[%s2658_s17 + $0x18] sm:$0xff] }
 0x4d4   :  { %796 = vmatpush.bf16.msra.mxu1 %v1975_v51 }
 0x4d8   :  { %v577_v52 = vpop.f32.mrf.mxu1 }
 0x4e0   :  { %v579_v53 = vpop.f32.mrf.mxu1 }
 0x4e1   :  { %v1973_v53 = vld [vmem:[%s2658_s17 + $0x8] sm:$0xff] }
 0x550   :  { %v558_v56 = vpop.f32.mrf.mxu0 }
 0x551   :  { %v581_v57 = vpack.c.bf16 %v577_v52, %v558_v56  ;;  %v1974_v52 = vld [vmem:[%s2658_s17 + $0x10] sm:$0xff] }
 0x552   :  { %797 = vmatpush.bf16.msra.mxu1 %v1974_v52 }
 0x553   :  { %1754 = vmatmul.msk.bf16.vlgmr.msrb.gmra.mxu2 %vm261_vm8, %v581_v57  ;;  %v1972_v57 = vld [vmem:[%s2658_s17] sm:$0xff] }
 0x556   :  { %798 = vmatpush.bf16.msra.mxu1 %v1973_v53 }
 0x558   :  { %v560_v58 = vpop.f32.mrf.mxu0 }
 0x55a   :  { %799 = vmatpush.bf16.msra.mxu1 %v1972_v57 }
 0x5d6   :  { %v603_v60 = vpop.f32.mrf.mxu2 }
 0x5d7   :  { %v627_v61 = vadd.f32 %v626_v59, %v603_v60 }
 0x5d9   :  { %v631_v63 = vadd.f32 %v627_v61, %v2227_v0 }
 0x5db   :  { %v2372_v1 = vadd.f32 %v2009_v62, %v631_v63 }
 0x5dd   :  { %v641_v3 = vsel %vm87_vm0, %v2372_v1, 0.0 }
 0x5de   :  { %642 = vadd.xlane.f32.xlu0 %v641_v3  ;;  %v605_v5 = vpop.f32.mrf.mxu2 }
 0x5df   :  { %v629_v6 = vadd.f32 %v628_v4, %v605_v5 }
 0x5e1   :  { %v632_v7 = vadd.f32 %v629_v6, %v2234_v2 }
 0x5e3   :  { %v2377_v8 = vadd.f32 %v2009_v62, %v632_v7 }
 0x5e5   :  { %v644_v9 = vsel %vm87_vm0, %v2377_v8, 0.0 }
 0x5e6   :  { %645 = vadd.xlane.f32.xlu1 %v644_v9 }
 0x651   :  { %v643_v11 = vpop.xlane.xlu0 %642 }
 0x652   :  { %v647_v0 = vmul.f32 %v643_v11, %v2238_v10 }
 0x654   :  { %v649_v12 = vsub.f32 %v2372_v1, %v647_v0 }
 0x656   :  { %v651_v13 = vmul.f32 %v649_v12, %v649_v12 }
 0x658   :  { %v653_v14 = vsel %vm87_vm0, %v651_v13, 0.0 }
 0x659   :  { %654 = vadd.xlane.f32.xlu2 %v653_v14  ;;  %v646_v15 = vpop.xlane.xlu1 %645 }
 0x65a   :  { %v648_v16 = vmul.f32 %v646_v15, %v2238_v10 }
 0x65c   :  { %v650_v2 = vsub.f32 %v2377_v8, %v648_v16 }
 0x65e   :  { %v652_v17 = vmul.f32 %v650_v2, %v650_v2 }
 0x660   :  { %v656_v18 = vsel %vm87_vm0, %v652_v17, 0.0 }
 0x661   :  { %657 = vadd.xlane.f32.xlu0 %v656_v18 }
 0x6cc   :  { %v655_v20 = vpop.xlane.xlu2 %654 }
 0x6cd   :  { %v659_v21 = vmul.f32 %v655_v20, %v2238_v10 }
 0x6cf   :  { %v661_v55 = vadd.f32 1e-05, %v659_v21 }
 0x6d1   :  { %2053 = vrsqrt.f32 %v661_v55  ;;  %vm669_vm12 = vweird.f32 %v661_v55 }
 0x6d4   :  { %v658_v23 = vpop.xlane.xlu0 %657 }
 0x6d5   :  { %v660_v25 = vmul.f32 %v658_v23, %v2238_v10 }
 0x6d7   :  { %v2054_v27 = vpop.eup %2053  ;;  %v662_v28 = vadd.f32 1e-05, %v660_v25 }
 0x6d8   :  { %v664_v29 = vmul.f32 %v2054_v27, %v661_v55  ;;  %vm670_vm11 = vweird.f32 %v2054_v27 }
 0x6d9   :  { %2055 = vrsqrt.f32 %v662_v28  ;;  %vm671_vm13 = vmor %vm669_vm12, %vm670_vm11  ;;  %vm679_vm15 = vweird.f32 %v662_v28 }
 0x6da   :  { %v665_v30 = vmul.f32 %v2054_v27, %v664_v29 }
 0x6dc   :  { %v666_v31 = vmul.f32 0.5, %v665_v30 }
 0x6de   :  { %v667_v32 = vsub.f32 1.5, %v666_v31 }
 0x6df   :  { %v2056_v33 = vpop.eup %2055 }
 0x6e0   :  { %v668_v34 = vmul.f32 %v2054_v27, %v667_v32  ;;  %v674_v35 = vmul.f32 %v2056_v33, %v662_v28  ;;  %vm680_vm14 = vweird.f32 %v2056_v33 }
 0x6e1   :  { %vm681_vm1 = vmor %vm679_vm15, %vm680_vm14 }
 0x6e2   :  { %v675_v36 = vmul.f32 %v2056_v33, %v674_v35  ;;  %v672_v37 = vsel %vm671_vm13, %v2054_v27, %v668_v34 }
 0x6e3   :  { %v683_v41 = vmul.f32 %v672_v37, %v649_v12  ;;  %v1977_v37 = vld [vmem:[%s2691_s3 + $0x28] sm:$0xff] }
 0x6e4   :  { %v676_v38 = vmul.f32 0.5, %v675_v36  ;;  %898 = vmatpush.bf16.msra.mxu2 %v1977_v37 }
 0x6e5   :  { %v688_v45 = vmul.f32 %v2010_v40, %v683_v41 }
 0x6e6   :  { %v677_v39 = vsub.f32 1.5, %v676_v38  ;;  %v1979_v38 = vld [vmem:[%s2692_s1 + $0x28] sm:$0xff] }
 0x6e7   :  { %v693_v48 = vadd.f32 %v2011_v44, %v688_v45  ;;  %934 = vmatpush.bf16.msra.mxu3 %v1979_v38  ;;  %v1980_v45 = vld [vmem:[%s2693_s7 + $0x20] sm:$0xff] }
 0x6e8   :  { %v678_v42 = vmul.f32 %v2056_v33, %v677_v39  ;;  %v1981_v39 = vld [vmem:[%s2693_s7 + $0x28] sm:$0xff] }
 0x6e9   :  { %970 = vmatpush.bf16.msrb.mxu0 %v1981_v39 }
 0x6ea   :  { %v682_v43 = vsel %vm681_vm1, %v2056_v33, %v678_v42 }
 0x6eb   :  { %v684_v46 = vmul.f32 %v682_v43, %v650_v2  ;;  %v1976_v43 = vld [vmem:[%s2691_s3 + $0x20] sm:$0xff] }
 0x6ec   :  { %899 = vmatpush.bf16.msra.mxu2 %v1976_v43 }
 0x6ed   :  { %v689_v47 = vmul.f32 %v2010_v40, %v684_v46  ;;  %971 = vmatpush.bf16.msrb.mxu0 %v1980_v45 }
 0x6ef   :  { %v694_v49 = vadd.f32 %v2011_v44, %v689_v47  ;;  %v1978_v44 = vld [vmem:[%s2692_s1 + $0x20] sm:$0xff] }
 0x6f0   :  { %935 = vmatpush.bf16.msra.mxu3 %v1978_v44 }
 0x6f1   :  { %v695_v50 = vpack.c.bf16 %v694_v49, %v693_v48 }
 0x6f3   :  { %1768 = vmatmul.msk.bf16.vlgmr.msra.gmra.mxu0 %vm87_vm0, %v695_v50 }
 0x770   :  { %v728_v56 = vpop.f32.mrf.mxu0 }
 0x771   :  { %v729_v58 = vadd.f32 %v2012_v54, %v728_v56 }
 0x773   :  { %v733_v59 = vmul.f32 %v729_v58, %v729_v58 }
 0x775   :  { %v735_v60 = vmul.f32 %v733_v59, %v729_v58 }
 0x777   :  { %v737_v61 = vmul.f32 0.044715, %v735_v60 }
 0x778   :  { %v730_v62 = vpop.f32.mrf.mxu0 }
 0x779   :  { %v739_v63 = vadd.f32 %v737_v61, %v729_v58  ;;  %v731_v3 = vadd.f32 %v2012_v54, %v730_v62  ;;  %v2014_v62 = vld [vmem:[%s2694_s10 + $0x1] ss:$0 sm:$0xff] }
 0x77b   :  { %v741_v4 = vmul.f32 0.7978846, %v739_v63  ;;  %v734_v5 = vmul.f32 %v731_v3, %v731_v3 }
 0x77d   :  { %v736_v6 = vmul.f32 %v734_v5, %v731_v3  ;;  %2057 = vtanh.f32 %v741_v4  ;;  %v2015_v5 = vld [vmem:[%s2695_s28 + $0x1] ss:$0 sm:$0xff] }
 0x77f   :  { %v738_v7 = vmul.f32 0.044715, %v736_v6 }
 0x781   :  { %v740_v9 = vadd.f32 %v738_v7, %v731_v3 }
 0x783   :  { %v742_v11 = vmul.f32 0.7978846, %v740_v9  ;;  %v2058_v0 = vpop.eup %2057 }
 0x784   :  { %v745_v12 = vadd.f32 1.0, %v2058_v0 }
 0x785   :  { %2059 = vtanh.f32 %v742_v11 }
 0x786   :  { %v747_v14 = vmul.f32 0.5, %v745_v12 }
 0x788   :  { %v749_v2 = vmul.f32 %v747_v14, %v729_v58 }
 0x78b   :  { %v2060_v13 = vpop.eup %2059 }
 0x78c   :  { %v746_v15 = vadd.f32 1.0, %v2060_v13  ;;  %v2016_v13 = vld [vmem:[%s2698_s25 + $0x2] ss:$0 sm:$0xff] }
 0x78e   :  { %v748_v16 = vmul.f32 0.5, %v746_v15 }
 0x790   :  { %v750_v17 = vmul.f32 %v748_v16, %v731_v3  ;;  %v2018_v16 = vld [vmem:[%s2696_s4 + $0x2] ss:$0 sm:$0xff] }
 0x792   :  { %v751_v18 = vpack.c.bf16 %v750_v17, %v749_v2 }
 0x794   :  { %1785 = vmatmul.msk.bf16.vlgmr.msra.gmra.mxu1 %vm788_vm2, %v751_v18 }
 0x811   :  { %v801_v20 = vpop.f32.mrf.mxu1 }
 0x812   :  { %v802_v21 = vadd.f32 %v2013_v19, %v801_v20 }
 0x814   :  { %v2422_v55 = vadd.f32 %v802_v21, %v2372_v1  ;;  %v2017_v21 = vld [vmem:[%s2697_s8 + $0x2] ss:$0 sm:$0xff] }
 0x816   :  { %v812_v22 = vsel %vm87_vm0, %v2422_v55, 0.0 }
 0x817   :  { %813 = vadd.xlane.f32.xlu1 %v812_v22 }
 0x819   :  { %v803_v23 = vpop.f32.mrf.mxu1 }
 0x81a   :  { %v804_v25 = vadd.f32 %v2013_v19, %v803_v23 }
 0x81c   :  { %v2427_v27 = vadd.f32 %v804_v25, %v2377_v8  ;;  %v1984_v25 = vld [vmem:[%s2691_s3 + $0x38] sm:$0xff] }
 0x81e   :  { %v815_v28 = vsel %vm87_vm0, %v2427_v27, 0.0 }
 0x81f   :  { %816 = vadd.xlane.f32.xlu2 %v815_v28 }
 0x88a   :  { %v814_v29 = vpop.xlane.xlu1 %813 }
 0x88b   :  { %v818_v30 = vmul.f32 %v814_v29, %v2238_v10 }
 0x88d   :  { %v820_v31 = vsub.f32 %v2422_v55, %v818_v30 }
 0x88f   :  { %v822_v1 = vmul.f32 %v820_v31, %v820_v31 }
 0x891   :  { %v824_v32 = vsel %vm87_vm0, %v822_v1, 0.0  ;;  %v1983_v1 = vld [vmem:[%s2691_s3 + $0x30] sm:$0xff] }
 0x892   :  { %v817_v33 = vpop.xlane.xlu2 %816  ;;  %825 = vadd.xlane.f32.xlu0 %v824_v32 }
 0x893   :  { %v819_v34 = vmul.f32 %v817_v33, %v2238_v10 }
 0x895   :  { %v821_v35 = vsub.f32 %v2427_v27, %v819_v34 }
 0x897   :  { %v823_v8 = vmul.f32 %v821_v35, %v821_v35 }
 0x899   :  { %v827_v36 = vsel %vm87_vm0, %v823_v8, 0.0 }
 0x89a   :  { %828 = vadd.xlane.f32.xlu1 %v827_v36  ;;  %v1986_v36 = vld [vmem:[%s2692_s1 + $0x38] sm:$0xff] }
 0x905   :  { %v826_v40 = vpop.xlane.xlu0 %825 }
 0x906   :  { %v830_v41 = vmul.f32 %v826_v40, %v2238_v10  ;;  %v1985_v40 = vld [vmem:[%s2692_s1 + $0x30] sm:$0xff]  ;;  %s2700_s1 = sld [smem:[#allocation12_spill]] }
 0x908   :  { %v832_v42 = vadd.f32 1e-05, %v830_v41 }
 0x90a   :  { %2061 = vrsqrt.f32 %v832_v42  ;;  %vm840_vm4 = vweird.f32 %v832_v42 }
 0x90d   :  { %v829_v46 = vpop.xlane.xlu1 %828 }
 0x90e   :  { %v831_v47 = vmul.f32 %v829_v46, %v2238_v10  ;;  %v2019_v46 = vld [vmem:[%s2697_s8 + $0x3] ss:$0 sm:$0xff]  ;;  %s2702_s8 = sld [smem:[#allocation14_spill]] }
 0x910   :  { %v2062_v48 = vpop.eup %2061  ;;  %v833_v49 = vadd.f32 1e-05, %v831_v47 }
 0x911   :  { %v835_v50 = vmul.f32 %v2062_v48, %v832_v42  ;;  %vm841_vm3 = vweird.f32 %v2062_v48 }
 0x912   :  { %2063 = vrsqrt.f32 %v833_v49  ;;  %vm842_vm5 = vmor %vm840_vm4, %vm841_vm3  ;;  %vm850_vm7 = vweird.f32 %v833_v49 }
 0x913   :  { %v836_v51 = vmul.f32 %v2062_v48, %v835_v50 }
 0x915   :  { %v837_v52 = vmul.f32 0.5, %v836_v51 }
 0x917   :  { %v838_v53 = vsub.f32 1.5, %v837_v52 }
 0x918   :  { %v2064_v54 = vpop.eup %2063 }
 0x919   :  { %v839_v56 = vmul.f32 %v2062_v48, %v838_v53  ;;  %v845_v57 = vmul.f32 %v2064_v54, %v833_v49  ;;  %vm851_vm6 = vweird.f32 %v2064_v54  ;;  %v2020_v53 = vld [vmem:[%s2696_s4 + $0x3] ss:$0 sm:$0xff]  ;;  %s2701_s4 = sld [smem:[#allocation13_spill]] }
 0x91a   :  { %vm852_vm11 = vmor %vm850_vm7, %vm851_vm6 }
 0x91b   :  { %v846_v58 = vmul.f32 %v2064_v54, %v845_v57  ;;  %v843_v59 = vsel %vm842_vm5, %v2062_v48, %v839_v56 }
 0x91c   :  { %v854_v63 = vmul.f32 %v843_v59, %v820_v31 }
 0x91d   :  { %v847_v60 = vmul.f32 0.5, %v846_v58 }
 0x91e   :  { %v859_v6 = vmul.f32 %v2014_v62, %v854_v63 }
 0x91f   :  { %v848_v61 = vsub.f32 1.5, %v847_v60 }
 0x920   :  { %v864_v11 = vadd.f32 %v2015_v5, %v859_v6 }
 0x921   :  { %v849_v3 = vmul.f32 %v2064_v54, %v848_v61 }
 0x923   :  { %v853_v4 = vsel %vm852_vm11, %v2064_v54, %v849_v3 }
 0x924   :  { %v855_v7 = vmul.f32 %v853_v4, %v821_v35 }
 0x926   :  { %v860_v9 = vmul.f32 %v2014_v62, %v855_v7 }
 0x928   :  { %v865_v0 = vadd.f32 %v2015_v5, %v860_v9 }
 0x92a   :  { %v2463_v12 = vpack.c.bf16 %v865_v0, %v864_v11 }
 0x92c   :  { %1801 = vmatmul.msk.bf16.vlgmr.msra.gmra.mxu2 %vm87_vm0, %v2463_v12  ;;  %1815 = vmatmul.msk.bf16.vlgmr.msra.gmra.mxu3 %vm87_vm0, %v2463_v12 }
 0x92d   :  { %1829 = vmatmul.msk.bf16.vlgmr.msrb.gmra.mxu0 %vm87_vm0, %v2463_v12 }
 0x9aa   :  { %v973_v14 = vpop.f32.mrf.mxu0 }
 0x9ab   :  { %v974_v15 = vadd.f32 %v2016_v13, %v973_v14 }
 0x9ad   :  { %v982_v2 = vpack.c.bf16 %v974_v15, %v974_v15 }
 0x9af   :  { %v1050_v17 = vsel %vm328_vm9, %v982_v2, 0  ;;  %v937_v18 = vpop.f32.mrf.mxu3  ;;  %v901_v20 = vpop.f32.mrf.mxu2 }
 0x9b0   :  { %v938_v19 = vadd.f32 %v2018_v16, %v937_v18  ;;  %1059 = vmatpush.bf16.msrb.mxu3 %v1050_v17  ;;  %v902_v31 = vadd.f32 %v2017_v21, %v901_v20  ;;  %v1988_v20 = vld [vmem:[%s2693_s7 + $0x38] sm:$0xff] }
 0x9b2   :  { %v980_v22 = vpack.c.bf16 %v938_v19, %v938_v19  ;;  %v975_v23 = vpop.f32.mrf.mxu0  ;;  %v978_v35 = vpack.c.bf16 %v902_v31, %v902_v31 }
 0x9b3   :  { %v976_v28 = vadd.f32 %v2016_v13, %v975_v23 }
 0x9b4   :  { %v988_v29 = vsel %vm261_vm8, %v980_v22, 0  ;;  %1188 = vmatpush.bf16.msra.mxu3 %v1988_v20 }
 0x9b5   :  { %v983_v30 = vpack.c.bf16 %v976_v28, %v976_v28  ;;  %997 = vmatpush.bf16.xpose.msrb.mxu1 %v988_v29 }
 0x9b7   :  { %v1069_v32 = vsel %vm328_vm9, %v983_v30, 0  ;;  %v939_v33 = vpop.f32.mrf.mxu3  ;;  %v903_v37 = vpop.f32.mrf.mxu2 }
 0x9b8   :  { %v940_v34 = vadd.f32 %v2018_v16, %v939_v33  ;;  %1078 = vmatpush.bf16.msra.mxu0 %v1069_v32  ;;  %v904_v39 = vadd.f32 %v2017_v21, %v903_v37  ;;  %v1987_v21 = vld [vmem:[%s2693_s7 + $0x30] sm:$0xff] }
 0x9b9   :  { %1189 = vmatpush.bf16.msra.mxu3 %v1987_v21  ;;  %v1982_v32 = vld [vmem:[%s2651_s11 + $0x10] sm:$0xff] }
 0x9ba   :  { %v981_v8 = vpack.c.bf16 %v940_v34, %v940_v34  ;;  %v979_v41 = vpack.c.bf16 %v904_v39, %v904_v39 }
 0x9bc   :  { %v1007_v38 = vsel %vm261_vm8, %v981_v8, 0  ;;  %1830 = vmatmul.msk.bf16.vlgmr.msrb.gmra.mxu1 %vm261_vm8, %v978_v35 }
 0x9bd   :  { %1116 = vmatpush.bf16.msra.mxu1 %v1984_v25  ;;  %1016 = vmatpush.bf16.xpose.msrb.mxu2 %v1007_v38 }
 0x9c1   :  { %1117 = vmatpush.bf16.msra.mxu1 %v1983_v1 }
 0x9c4   :  { %1831 = vmatmul.msk.bf16.vlgmr.msrb.gmra.mxu2 %vm261_vm8, %v979_v41 }
 0x9c5   :  { %1152 = vmatpush.bf16.msra.mxu2 %v1986_v36  ;;  %v2021_v36 = vld [vmem:[%s2698_s25 + $0x3] ss:$0 sm:$0xff] }
 0x9c9   :  { %1153 = vmatpush.bf16.msra.mxu2 %v1985_v40 }
 0x9cc   :  { %1849 = vmatmul.msk.bf16.vlgmr.msra.gmra.mxu1 %vm87_vm0, %v2463_v12 }
 0x9d4   :  { %1863 = vmatmul.msk.bf16.vlgmr.msra.gmra.mxu2 %vm87_vm0, %v2463_v12 }
 0xa39   :  { %v999_v42 = vpop.f32.mrf.mxu1 }
 0xa3a   :  { %v1000_v43 = vadd.f32 %v999_v42, %v2314_v24 }
 0xa3c   :  { %v1022_v44 = vsel %vm300_vm10, %v1000_v43, -inf }
 0xa3d   :  { %1023 = vmax.xlane.f32.xlu1 %v1022_v44 }
 0xa41   :  { %v1001_v45 = vpop.f32.mrf.mxu1 }
 0xa47   :  { %v1018_v47 = vpop.f32.mrf.mxu2 }
 0xa48   :  { %v1019_v48 = vadd.f32 %v1018_v47, %v2319_v26 }
 0xa49   :  { %v1119_v49 = vpop.f32.mrf.mxu1 }
 0xa4a   :  { %v1120_v50 = vadd.f32 %v2019_v46, %v1119_v49  ;;  %v1025_v51 = vsel %vm300_vm10, %v1019_v48, -inf }
 0xa4b   :  { %1026 = vmax.xlane.f32.xlu2 %v1025_v51 }
 0xa4c   :  { %v1196_v1 = vpack.c.bf16 %v1120_v50, %v1120_v50 }
 0xa4f   :  { %v1020_v52 = vpop.f32.mrf.mxu2 }
 0xa51   :  { %v1121_v62 = vpop.f32.mrf.mxu1 }
 0xa52   :  { %v1122_v3 = vadd.f32 %v2019_v46, %v1121_v62 }
 0xa54   :  { %v1197_v4 = vpack.c.bf16 %v1122_v3, %v1122_v3 }
 0xa57   :  { %v1155_v54 = vpop.f32.mrf.mxu2 }
 0xa58   :  { %v1156_v56 = vadd.f32 %v2020_v53, %v1155_v54 }
 0xa5a   :  { %v1198_v57 = vpack.c.bf16 %v1156_v56, %v1156_v56 }
 0xa5c   :  { %v1206_v58 = vsel %vm261_vm8, %v1198_v57, 0 }
 0xa5d   :  { %1215 = vmatpush.bf16.xpose.msrb.mxu0 %v1206_v58 }
 0xa5f   :  { %v1157_v59 = vpop.f32.mrf.mxu2 }
 0xa60   :  { %v1158_v60 = vadd.f32 %v2020_v53, %v1157_v59 }
 0xa62   :  { %v1199_v61 = vpack.c.bf16 %v1158_v60, %v1158_v60 }
 0xa64   :  { %v1225_v63 = vsel %vm261_vm8, %v1199_v61, 0 }
 0xa65   :  { %1234 = vmatpush.bf16.xpose.msrb.mxu1 %v1225_v63 }
 0xa6c   :  { %1879 = vmatmul.msk.bf16.vlgmr.msrb.gmra.mxu1 %vm261_vm8, %v1197_v4 }
 0xa6d   :  { %1345 = vmatpush.bf16.msra.mxu1 %v1982_v32 }
 0xab0   :  { %v1024_v5 = vpop.xlane.xlu1 %1023 }
 0xab1   :  { %v1028_v6 = vsub.f32 %v1000_v43, %v1024_v5 }
 0xab3   :  { %v1030_v7 = vmul.f32 1.442695, %v1028_v6 }
 0xab5   :  { %2065 = vpow2.f32 %v1030_v7 }
 0xabb   :  { %v2066_v9 = vpop.eup %2065 }
 0xabc   :  { %v1034_v11 = vsel %vm300_vm10, %v2066_v9, 0.0 }
 0xabd   :  { %1035 = vadd.xlane.f32.xlu2 %v1034_v11 }
 0xabe   :  { %v1027_v0 = vpop.xlane.xlu2 %1026 }
 0xabf   :  { %v1029_v13 = vsub.f32 %v1019_v48, %v1027_v0 }
 0xac1   :  { %v1032_v14 = vmul.f32 1.442695, %v1029_v13 }
 0xac3   :  { %2067 = vpow2.f32 %v1032_v14 }
 0xac9   :  { %v2068_v15 = vpop.eup %2067 }
 0xaca   :  { %v1037_v16 = vsel %vm300_vm10, %v2068_v15, 0.0 }
 0xacb   :  { %1038 = vadd.xlane.f32.xlu0 %v1037_v16 }
 0xae9   :  { %v1236_v2 = vpop.f32.mrf.mxu1 }
 0xaea   :  { %v1237_v17 = vadd.f32 %v1236_v2, %v2319_v26  ;;  %v2022_v2 = vld [vmem:[%s2652_s12 + $0x1] ss:$0 sm:$0xff] }
 0xaec   :  { %v1243_v18 = vsel %vm300_vm10, %v1237_v17, -inf }
 0xaed   :  { %1244 = vmax.xlane.f32.xlu1 %v1243_v18 }
 0xaf1   :  { %v1238_v19 = vpop.f32.mrf.mxu1 }
 0xb30   :  { %v1036_v22 = vpop.xlane.xlu2 %1035 }
 0xb31   :  { %2069 = vrcp.f32 %v1036_v22 }
 0xb37   :  { %v2070_v23 = vpop.eup %2069 }
 0xb38   :  { %v1042_v25 = vmul.f32 %v2070_v23, %v2066_v9  ;;  %v1989_v9 = vld [vmem:[%s2651_s11 + $0x18] sm:$0xff] }
 0xb3a   :  { %v1044_v28 = vpack.c.bf16 %v1042_v25, %v1042_v25 }
 0xb3c   :  { %1832 = vmatmul.msk.bf16.vlgmr.msrb.gmra.mxu3 %vm300_vm10, %v1044_v28 }
 0xb3e   :  { %v1039_v26 = vpop.xlane.xlu0 %1038 }
 0xb3f   :  { %2071 = vrcp.f32 %v1039_v26 }
 0xb45   :  { %v2072_v29 = vpop.eup %2071 }
 0xb46   :  { %v1043_v30 = vmul.f32 %v2072_v29, %v2068_v15 }
 0xb48   :  { %v1045_v31 = vpack.c.bf16 %v1043_v30, %v1043_v30 }
 0xb4a   :  { %1833 = vmatmul.msk.bf16.vlgmr.msra.gmra.mxu0 %vm300_vm10, %v1045_v31 }
 0xb4b   :  { %1322 = vmatpush.bf16.msra.mxu0 %v1989_v9  ;;  %v1992_v9 = vld [vmem:[%s2658_s17 + $0x20] sm:$0xff] }
 0xb4c   :  { %1877 = vmatmul.msk.bf16.vlgmr.msra.gmra.mxu3 %vm87_vm0, %v2463_v12 }
 0xb5a   :  { %1878 = vmatmul.msk.bf16.vlgmr.msrb.gmra.mxu0 %vm261_vm8, %v1196_v1 }
 0xb60   :  { %v1245_v37 = vpop.xlane.xlu1 %1244 }
 0xb61   :  { %v1247_v40 = vsub.f32 %v1237_v17, %v1245_v37 }
 0xb63   :  { %v1250_v43 = vmul.f32 1.442695, %v1247_v40 }
 0xb65   :  { %2073 = vpow2.f32 %v1250_v43 }
 0xb6b   :  { %v2074_v51 = vpop.eup %2073 }
 0xb6c   :  { %v1255_v53 = vsel %vm300_vm10, %v2074_v51, 0.0 }
 0xbbf   :  { %v1061_v33 = vpop.f32.mrf.mxu3 }
 0xbc7   :  { %v1063_v34 = vpop.f32.mrf.mxu3  ;;  %v1080_v35 = vpop.f32.mrf.mxu0 }
 0xbc8   :  { %v1084_v8 = vpack.c.bf16 %v1080_v35, %v1061_v33  ;;  %v1991_v35 = vld [vmem:[%s2656_s15 + $0x18] sm:$0xff] }
 0xbca   :  { %1893 = vmatmul.msk.bf16.vlgmr.msra.gmra.mxu1 %vm261_vm8, %v1084_v8 }
 0xbcf   :  { %v1082_v12 = vpop.f32.mrf.mxu0  ;;  %v1191_v38 = vpop.f32.mrf.mxu3 }
 0xbd0   :  { %v1192_v39 = vadd.f32 %v2021_v36, %v1191_v38  ;;  %v1990_v12 = vld [vmem:[%s2656_s15 + $0x10] sm:$0xff] }
 0xbd2   :  { %v1200_v41 = vpack.c.bf16 %v1192_v39, %v1192_v39 }
 0xbd4   :  { %v1268_v42 = vsel %vm328_vm9, %v1200_v41, 0 }
 0xbd5   :  { %1277 = vmatpush.bf16.msrb.mxu2 %v1268_v42 }
 0xbd7   :  { %v1193_v44 = vpop.f32.mrf.mxu3  ;;  %v1217_v45 = vpop.f32.mrf.mxu0 }
 0xbd8   :  { %v1194_v46 = vadd.f32 %v2021_v36, %v1193_v44  ;;  %v1218_v47 = vadd.f32 %v1217_v45, %v2314_v24 }
 0xbd9   :  { %1451 = vmatpush.bf16.msra.mxu2 %v1991_v35 }
 0xbda   :  { %v1201_v48 = vpack.c.bf16 %v1194_v46, %v1194_v46  ;;  %v1240_v49 = vsel %vm300_vm10, %v1218_v47, -inf }
 0xbdb   :  { %1241 = vmax.xlane.f32.xlu0 %v1240_v49 }
 0xbdc   :  { %v1287_v50 = vsel %vm328_vm9, %v1201_v48, 0 }
 0xbdd   :  { %1296 = vmatpush.bf16.msrb.mxu3 %v1287_v50  ;;  %1452 = vmatpush.bf16.msra.mxu2 %v1990_v12 }
 0xbdf   :  { %v1219_v52 = vpop.f32.mrf.mxu0 }
 0xbe3   :  { %1256 = vadd.xlane.f32.xlu0 %v1255_v53  ;;  %v2023_v53 = vld [vmem:[%s2653_s13 + $0x1] ss:$0 sm:$0xff] }
 0xc47   :  { %v1347_v14 = vpop.f32.mrf.mxu1 }
 0xc4e   :  { %v1242_v54 = vpop.xlane.xlu0 %1241 }
 0xc4f   :  { %v1246_v56 = vsub.f32 %v1218_v47, %v1242_v54  ;;  %v1349_v20 = vpop.f32.mrf.mxu1 }
 0xc51   :  { %v1248_v57 = vmul.f32 1.442695, %v1246_v56 }
 0xc53   :  { %2075 = vpow2.f32 %v1248_v57 }
 0xc56   :  { %v1257_v58 = vpop.xlane.xlu0 %1256 }
 0xc57   :  { %2077 = vrcp.f32 %v1257_v58  ;;  %v2024_v58 = vld [vmem:[%s2654_s14 + $0x1] ss:$0 sm:$0xff] }
 0xc59   :  { %v2076_v24 = vpop.eup %2075 }
 0xc5a   :  { %v1252_v59 = vsel %vm300_vm10, %v2076_v24, 0.0 }
 0xc5b   :  { %1253 = vadd.xlane.f32.xlu2 %v1252_v59 }
 0xc5d   :  { %v2078_v60 = vpop.eup %2077 }
 0xc5e   :  { %v1261_v61 = vmul.f32 %v2078_v60, %v2074_v51 }
 0xc60   :  { %v1263_v62 = vpack.c.bf16 %v1261_v61, %v1261_v61 }
 0xc62   :  { %1881 = vmatmul.msk.bf16.vlgmr.msrb.gmra.mxu3 %vm300_vm10, %v1263_v62 }
 0xcce   :  { %v1254_v63 = vpop.xlane.xlu2 %1253 }
 0xccf   :  { %2079 = vrcp.f32 %v1254_v63 }
 0xcd5   :  { %v2080_v3 = vpop.eup %2079 }
 0xcd6   :  { %v1260_v4 = vmul.f32 %v2080_v3, %v2076_v24  ;;  %v1995_v3 = vld [vmem:[%s2658_s17 + $0x38] sm:$0xff] }
 0xcd7   :  { %1523 = vmatpush.bf16.msra.mxu3 %v1995_v3 }
 0xcd8   :  { %v1262_v5 = vpack.c.bf16 %v1260_v4, %v1260_v4  ;;  %v1994_v4 = vld [vmem:[%s2658_s17 + $0x30] sm:$0xff] }
 0xcda   :  { %1880 = vmatmul.msk.bf16.vlgmr.msrb.gmra.mxu2 %vm300_vm10, %v1262_v5  ;;  %v1993_v5 = vld [vmem:[%s2658_s17 + $0x28] sm:$0xff] }
 0xcdb   :  { %1524 = vmatpush.bf16.msra.mxu3 %v1994_v4 }
 0xcdf   :  { %1525 = vmatpush.bf16.msra.mxu3 %v1993_v5 }
 0xce3   :  { %1526 = vmatpush.bf16.msra.mxu3 %v1992_v9  ;;  %v2030_v9 = vld [vmem:[%s2701_s4] ss:$0 sm:$0xff] }
 0xce5   :  { %v1298_v6 = vpop.f32.mrf.mxu3 }
 0xced   :  { %v1300_v7 = vpop.f32.mrf.mxu3 }
 0xd5d   :  { %v1279_v11 = vpop.f32.mrf.mxu2 }
 0xd5e   :  { %v1302_v0 = vpack.c.bf16 %v1298_v6, %v1279_v11  ;;  %v2025_v6 = vld [vmem:[%s2655_s16 + $0x1] ss:$0 sm:$0xff] }
 0xd60   :  { %1888 = vmatmul.msk.bf16.vlgmr.msra.gmra.mxu0 %vm261_vm8, %v1302_v0 }
 0xd65   :  { %v1281_v13 = vpop.f32.mrf.mxu2 }
 0xddd   :  { %v1324_v15 = vpop.f32.mrf.mxu0 }
 0xdde   :  { %v1348_v16 = vadd.f32 %v1347_v14, %v1324_v15 }
 0xde0   :  { %v1352_v17 = vadd.f32 %v1348_v16, %v2422_v55 }
 0xde2   :  { %v2553_v18 = vadd.f32 %v2022_v2, %v1352_v17 }
 0xde4   :  { %v1365_v19 = vsel %vm87_vm0, %v2553_v18, 0.0 }
 0xde5   :  { %1366 = vadd.xlane.f32.xlu1 %v1365_v19  ;;  %v1326_v21 = vpop.f32.mrf.mxu0 }
 0xde6   :  { %v1350_v22 = vadd.f32 %v1349_v20, %v1326_v21 }
 0xde8   :  { %v1353_v23 = vadd.f32 %v1350_v22, %v2427_v27 }
 0xdea   :  { %v2558_v25 = vadd.f32 %v2022_v2, %v1353_v23 }
 0xdec   :  { %v1368_v28 = vsel %vm87_vm0, %v2558_v25, 0.0 }
 0xded   :  { %1369 = vadd.xlane.f32.xlu2 %v1368_v28 }
 0xe58   :  { %v1367_v26 = vpop.xlane.xlu1 %1366 }
 0xe59   :  { %v1371_v55 = vmul.f32 %v1367_v26, %v2238_v10 }
 0xe5b   :  { %v1373_v29 = vsub.f32 %v2553_v18, %v1371_v55 }
 0xe5d   :  { %v1375_v30 = vmul.f32 %v1373_v29, %v1373_v29 }
 0xe5f   :  { %v1377_v31 = vsel %vm87_vm0, %v1375_v30, 0.0 }
 0xe60   :  { %1378 = vadd.xlane.f32.xlu0 %v1377_v31  ;;  %v1370_v1 = vpop.xlane.xlu2 %1369 }
 0xe61   :  { %v1372_v32 = vmul.f32 %v1370_v1, %v2238_v10 }
 0xe63   :  { %v1374_v27 = vsub.f32 %v2558_v25, %v1372_v32 }
 0xe65   :  { %v1376_v33 = vmul.f32 %v1374_v27, %v1374_v27 }
 0xe67   :  { %v1380_v34 = vsel %vm87_vm0, %v1376_v33, 0.0 }
 0xe68   :  { %1381 = vadd.xlane.f32.xlu1 %v1380_v34  ;;  %v2026_v34 = vld [vmem:[%s2657_s18 + $0x1] ss:$0 sm:$0xff] }
 0xed3   :  { %v1379_v8 = vpop.xlane.xlu0 %1378 }
 0xed4   :  { %v1383_v36 = vmul.f32 %v1379_v8, %v2238_v10 }
 0xed6   :  { %v1385_v37 = vadd.f32 1e-05, %v1383_v36 }
 0xed8   :  { %2081 = vrsqrt.f32 %v1385_v37  ;;  %vm1393_vm10 = vweird.f32 %v1385_v37 }
 0xedb   :  { %v1382_v38 = vpop.xlane.xlu1 %1381 }
 0xedc   :  { %v1384_v39 = vmul.f32 %v1382_v38, %v2238_v10  ;;  %v1535_v38 = vld [vmem:[%s2659_s2] sm:$0xff] }
 0xede   :  { %v2082_v40 = vpop.eup %2081  ;;  %v1386_v41 = vadd.f32 1e-05, %v1384_v39 }
 0xedf   :  { %v1388_v42 = vmul.f32 %v2082_v40, %v1385_v37  ;;  %vm1394_vm9 = vweird.f32 %v2082_v40 }
 0xee0   :  { %2083 = vrsqrt.f32 %v1386_v41  ;;  %vm1395_vm12 = vmor %vm1393_vm10, %vm1394_vm9  ;;  %vm1403_vm14 = vweird.f32 %v1386_v41 }
 0xee1   :  { %v1389_v43 = vmul.f32 %v2082_v40, %v1388_v42 }
 0xee3   :  { %v1390_v44 = vmul.f32 0.5, %v1389_v43 }
 0xee5   :  { %v1391_v45 = vsub.f32 1.5, %v1390_v44 }
 0xee6   :  { %v2084_v46 = vpop.eup %2083 }
 0xee7   :  { %v1392_v47 = vmul.f32 %v2082_v40, %v1391_v45  ;;  %v1398_v48 = vmul.f32 %v2084_v46, %v1386_v41  ;;  %vm1404_vm13 = vweird.f32 %v2084_v46  ;;  %v1996_v45 = vld [vmem:[%s2663_s21] sm:$0xff] }
 0xee8   :  { %vm1405_vm15 = vmor %vm1403_vm14, %vm1404_vm13 }
 0xee9   :  { %v1399_v49 = vmul.f32 %v2084_v46, %v1398_v48  ;;  %v1396_v50 = vsel %vm1395_vm12, %v2082_v40, %v1392_v47 }
 0xeea   :  { %v1407_v54 = vmul.f32 %v1396_v50, %v1373_v29 }
 0xeeb   :  { %v1400_v51 = vmul.f32 0.5, %v1399_v49 }
 0xeec   :  { %v1412_v24 = vmul.f32 %v2023_v53, %v1407_v54 }
 0xeed   :  { %v1401_v52 = vsub.f32 1.5, %v1400_v51 }
 0xeee   :  { %v1417_v61 = vadd.f32 %v2024_v58, %v1412_v24 }
 0xeef   :  { %v1402_v56 = vmul.f32 %v2084_v46, %v1401_v52 }
 0xef1   :  { %v1406_v57 = vsel %vm1405_vm15, %v2084_v46, %v1402_v56  ;;  %v2027_v56 = vld [vmem:[%s2660_s19] ss:$0 sm:$0xff] }
 0xef2   :  { %v1408_v59 = vmul.f32 %v1406_v57, %v1374_v27 }
 0xef4   :  { %v1413_v60 = vmul.f32 %v2023_v53, %v1408_v59 }
 0xef6   :  { %v1418_v62 = vadd.f32 %v2024_v58, %v1413_v60 }
 0xef8   :  { %v1419_v63 = vpack.c.bf16 %v1418_v62, %v1417_v61  ;;  %v1999_v61 = vld [vmem:[%s2665_s23 + $0x8] sm:$0xff]  ;;  %v1998_v62 = vld [vmem:[%s2665_s23] sm:$0xff] }
 0xef9   :  { %1659 = vmatpush.bf16.msrb.mxu2 %v1999_v61 }
 0xefa   :  { %1910 = vmatmul.msk.bf16.vlgmr.msra.gmra.mxu2 %vm87_vm0, %v1419_v63  ;;  %v2029_v63 = vld [vmem:[%s2700_s1] ss:$0 sm:$0xff] }
 0xefd   :  { %1660 = vmatpush.bf16.msrb.mxu2 %v1998_v62 }
 0xf7d   :  { %v1454_v7 = vpop.f32.mrf.mxu2 }
 0xf7e   :  { %v1455_v11 = vadd.f32 %v2025_v6, %v1454_v7 }
 0xf80   :  { %v1459_v0 = vmul.f32 %v1455_v11, %v1455_v11 }
 0xf82   :  { %v1461_v13 = vmul.f32 %v1459_v0, %v1455_v11 }
 0xf84   :  { %v1463_v14 = vmul.f32 0.044715, %v1461_v13 }
 0xf85   :  { %v1456_v15 = vpop.f32.mrf.mxu2 }
 0xf86   :  { %v1465_v16 = vadd.f32 %v1463_v14, %v1455_v11  ;;  %v1457_v2 = vadd.f32 %v2025_v6, %v1456_v15 }
 0xf88   :  { %v1467_v17 = vmul.f32 0.7978846, %v1465_v16  ;;  %v1460_v19 = vmul.f32 %v1457_v2, %v1457_v2 }
 0xf8a   :  { %v1462_v20 = vmul.f32 %v1460_v19, %v1457_v2  ;;  %2085 = vtanh.f32 %v1467_v17 }
 0xf8c   :  { %v1464_v21 = vmul.f32 0.044715, %v1462_v20 }
 0xf8e   :  { %v1466_v22 = vadd.f32 %v1464_v21, %v1457_v2 }
 0xf90   :  { %v1468_v23 = vmul.f32 0.7978846, %v1466_v22  ;;  %v2086_v28 = vpop.eup %2085 }
 0xf91   :  { %v1471_v26 = vadd.f32 1.0, %v2086_v28 }
 0xf92   :  { %2087 = vtanh.f32 %v1468_v23 }
 0xf93   :  { %v1473_v29 = vmul.f32 0.5, %v1471_v26 }
 0xf95   :  { %v1475_v1 = vmul.f32 %v1473_v29, %v1455_v11 }
 0xf98   :  { %v2088_v55 = vpop.eup %2087 }
 0xf99   :  { %v1472_v30 = vadd.f32 1.0, %v2088_v55 }
 0xf9b   :  { %v1474_v31 = vmul.f32 0.5, %v1472_v30 }
 0xf9d   :  { %v1476_v32 = vmul.f32 %v1474_v31, %v1457_v2 }
 0xf9f   :  { %v1477_v27 = vpack.c.bf16 %v1476_v32, %v1475_v1 }
 0xfa1   :  { %1936 = vmatmul.msk.bf16.vlgmr.msra.gmra.mxu3 %vm788_vm2, %v1477_v27 }
0x1024   :  { %v1528_v33 = vpop.f32.mrf.mxu3 }
0x1025   :  { %v1529_v8 = vadd.f32 %v2026_v34, %v1528_v33 }
0x1027   :  { %v1533_v12 = vadd.f32 %v1529_v8, %v2553_v18  ;;  %v1997_v18 = vld [vmem:[%s2663_s21 + $0x8] sm:$0xff] }
0x1028   :  { %1621 = vmatpush.bf16.msrb.mxu1 %v1997_v18 }
0x102c   :  { %v1530_v35 = vpop.f32.mrf.mxu3  ;;  %1622 = vmatpush.bf16.msrb.mxu1 %v1996_v45 }
0x102d   :  { %v1531_v36 = vadd.f32 %v2026_v34, %v1530_v35 }
0x102f   :  { %v1534_v37 = vadd.f32 %v1531_v36, %v2558_v25 }
0x1031   :  { %1553 = vmatpush.msrb.mxu0 %v1534_v37 }
0x1033   :  { %1554 = vmatpush.msrb.mxu0 %v1533_v12 }
0x1034   :  { %1937 = vmatmul.msk.f32.vlgmr.msrb.gmra.mxu0 %vm261_vm8, %v1535_v38 }
0x10b1   :  { %v1556_v39 = vpop.f32.mrf.mxu0 }
0x10b2   :  { %v1561_v40 = vsel %vm87_vm0, %v1556_v39, 0.0 }
0x10b3   :  { %1562 = vadd.xlane.f32.xlu2 %v1561_v40 }
0x1126   :  { %v1563_v41 = vpop.xlane.xlu2 %1562 }
0x1127   :  { %v1564_v42 = vmul.f32 %v1563_v41, %v2238_v10 }
0x1129   :  { %v1565_v43 = vsub.f32 %v1556_v39, %v1564_v42 }
0x112b   :  { %v1566_v44 = vmul.f32 %v1565_v43, %v1565_v43 }
0x112d   :  { %v1567_v25 = vsel %vm87_vm0, %v1566_v44, 0.0 }
0x112e   :  { %1568 = vadd.xlane.f32.xlu0 %v1567_v25 }
0x11a1   :  { %v1569_v46 = vpop.xlane.xlu0 %1568 }
0x11a2   :  { %v1570_v47 = vmul.f32 %v1569_v46, %v2238_v10  ;;  %v2028_v10 = vld [vmem:[%s2661_s20] ss:$0 sm:$0xff] }
0x11a4   :  { %v1571_v48 = vadd.f32 1e-05, %v1570_v47 }
0x11a6   :  { %2089 = vrsqrt.f32 %v1571_v48  ;;  %vm1578_vm1 = vweird.f32 %v1571_v48 }
0x11ac   :  { %v2090_v49 = vpop.eup %2089 }
0x11ad   :  { %v1573_v50 = vmul.f32 %v2090_v49, %v1571_v48  ;;  %vm1579_vm8 = vweird.f32 %v2090_v49 }
0x11ae   :  { %vm1580_vm2 = vmor %vm1578_vm1, %vm1579_vm8 }
0x11af   :  { %v1574_v51 = vmul.f32 %v2090_v49, %v1573_v50 }
0x11b1   :  { %v1575_v52 = vmul.f32 0.5, %v1574_v51 }
0x11b3   :  { %v1576_v53 = vsub.f32 1.5, %v1575_v52 }
0x11b5   :  { %v1577_v54 = vmul.f32 %v2090_v49, %v1576_v53 }
0x11b7   :  { %v1581_v57 = vsel %vm1580_vm2, %v2090_v49, %v1577_v54 }
0x11b8   :  { %v1582_v58 = vmul.f32 %v1581_v57, %v1565_v43 }
0x11ba   :  { %v1586_v24 = vmul.f32 %v2027_v56, %v1582_v58 }
0x11bc   :  { %v1590_v59 = vadd.f32 %v2028_v10, %v1586_v24 }
0x11be   :  { %v1591_v60 = vpack.c.bf16 %v1590_v59, %v1590_v59 }
0x11c0   :  { %1946 = vmatmul.msk.bf16.vlgmr.msrb.gmra.mxu1 %vm87_vm0, %v1591_v60 }
0x123d   :  { %v1624_v3 = vpop.f32.mrf.mxu1 }
0x123e   :  { %v1625_v4 = vadd.f32 %v2029_v63, %v1624_v3 }
0x1240   :  { %2091 = vtanh.f32 %v1625_v4 }
0x1245   :  { %v1626_v5 = vpop.f32.mrf.mxu1 }
0x1246   :  { %v2092_v6 = vpop.eup %2091 }
0x1247   :  { %v1629_v7 = vpack.c.bf16 %v2092_v6, %v2092_v6 }
0x1249   :  { %1955 = vmatmul.msk.bf16.vlgmr.msrb.gmra.mxu2 %vm87_vm0, %v1629_v7 }
0x12cc   :  { %v1662_v11 = vpop.f32.mrf.mxu2 }
0x12cd   :  { %v1663_v0 = vadd.f32 %v2030_v9, %v1662_v11 }
0x12cf   :  { %1666 = vst [vmem:[%s2702_s8] sm:$0xff] %v1663_v0 }
0x12d4   :  { %v1664_v13 = vpop.f32.mrf.mxu2 }

</bundles_post_ra>
